<compile_context>
chip_gen: v5e
topology: v5e:2x2
jax: 0.10.0
libtpu: 0.0.40
codegen_flags: <defaults>
</compile_context>

<pallas_src>
import functools

import jax
import jax.numpy as jnp
from jax.experimental import pallas as pl
from jax.experimental.pallas import tpu as pltpu

HIDDEN = 64
INPUT = 21 * 2      # 42
OUTPUT = 5
NUM_LAYERS = 2      # hard-coded as two explicit stacked cells below


def lstm_fc_softmax_kernel(x_ref, wih0_ref, whh0_ref, b0_ref,
                           w1_ref, b1_ref, wfc_ref, bfc_ref, out_ref,
                           *, seq_len):
    """Whole forward pass: stacked-LSTM recurrence + FC + softmax.

    x_ref  : (T*Bp, INPUT)   time-major, flattened: rows [t*Bp : (t+1)*Bp] are timestep t
    wih0   : (INPUT, 4H)     layer-0 input weights (transposed vs. PyTorch)
    whh0   : (H, 4H)         layer-0 recurrent weights
    b0     : (1, 4H)         layer-0 combined bias (b_ih + b_hh)
    w1     : (2H, 4H)        fused layer-1 weights: rows 0..H-1 = wih1, rows H..2H-1 = whh1
    b1     : (1, 4H)         layer-1 combined bias
    wfc    : (H, OUTPUT), bfc: (1, OUTPUT)
    out_ref: (Bp, OUTPUT)    softmax probabilities
    """
    H = HIDDEN
    Bp = x_ref.shape[0] // seq_len

    # Cast weights to bf16 ONCE for full-rate MXU on v6e/v7x (f32 accumulation below).
    wih0 = wih0_ref[...].astype(jnp.bfloat16)        # (INPUT, 4H)
    whh0 = whh0_ref[...].astype(jnp.bfloat16)        # (H, 4H)
    w1 = w1_ref[...].astype(jnp.bfloat16)            # (2H, 4H)

    # Hoisted layer-0 input projection: one well-shaped MXU matmul over ALL timesteps,
    # bias absorbed here (outside the recurrence).
    xproj = jnp.dot(x_ref[...].astype(jnp.bfloat16), wih0,
                    preferred_element_type=jnp.float32) + b0_ref[...]   # (T*Bp, 4H), f32

    # Layer-1 bias broadcast hoisted out of the loop (JAX does not CSE broadcast_in_dim).
    b1 = jnp.broadcast_to(b1_ref[...], (Bp, 4 * H))

    def gates_to_hc(gates, c):
        # All element-wise math in f32 (v5e has no bf16 VPU/EUP).
        i = jax.nn.sigmoid(gates[:, 0:H])
        f = jax.nn.sigmoid(gates[:, H:2 * H])
        g = jnp.tanh(gates[:, 2 * H:3 * H])
        o = jax.nn.sigmoid(gates[:, 3 * H:4 * H])
        c_new = f * c + i * g
        return o * jnp.tanh(c_new), c_new

    h0 = jnp.zeros((Bp, H), jnp.float32)
    c0 = jnp.zeros((Bp, H), jnp.float32)
    h1 = jnp.zeros((Bp, H), jnp.float32)
    c1 = jnp.zeros((Bp, H), jnp.float32)

    # Fully unrolled time loop (seq_len is static): gives the scheduler cross-iteration
    # visibility and makes every xproj slice a static sublane-aligned slice.
    # For very long sequences one would instead grid over T-chunks with h/c in VMEM scratch.
    for t in range(seq_len):
        xp_t = xproj[t * Bp:(t + 1) * Bp, :]                      # static slice, (Bp, 4H)

        # layer 0: only the recurrent matmul sits on the serial chain
        g0 = xp_t + jnp.dot(h0.astype(jnp.bfloat16), whh0,
                            preferred_element_type=jnp.float32)
        h0, c0 = gates_to_hc(g0, c0)

        # layer 1: single fused matmul, K = 2H = 128 fully feeds the MXU contraction
        h01 = jnp.concatenate([h0, h1], axis=1).astype(jnp.bfloat16)   # (Bp, 2H)
        g1 = jnp.dot(h01, w1, preferred_element_type=jnp.float32) + b1
        h1, c1 = gates_to_hc(g1, c1)

    # fc + softmax(dim=1) on the last timestep of the top layer (epilogue, f32).
    logits = jnp.dot(h1, wfc_ref[...], preferred_element_type=jnp.float32) + bfc_ref[...]
    m = jnp.max(logits, axis=1, keepdims=True)
    e = jnp.exp(logits - m)
    s = jnp.sum(e, axis=1, keepdims=True)
    out_ref[...] = e * pl.reciprocal(s, approx=True)


def hand_orientation_forward(x, kparams):
    """x: (B, T, INPUT) float32, batch-first like the PyTorch module.

    kparams: dict from prepare_kernel_params() (fused layer-1 weights).
    """
    B, T, I = x.shape
    assert I == INPUT
    x = x.astype(jnp.float32)

    # Pad batch to a full sublane tile (>=8) so matmul M / vregs aren't mostly masked.
    Bp = max(8, ((B + 7) // 8) * 8)
    if Bp != B:
        x = jnp.pad(x, ((0, Bp - B), (0, 0), (0, 0)))

    # Time-major, flattened: rows [t*Bp:(t+1)*Bp] of x2d hold timestep t for all batches,
    # so the hoisted layer-0 input projection is one contiguous matmul.
    x2d = jnp.transpose(x, (1, 0, 2)).reshape(T * Bp, INPUT)

    out = pl.pallas_call(
        functools.partial(lstm_fc_softmax_kernel, seq_len=T),
        out_shape=jax.ShapeDtypeStruct((Bp, OUTPUT), jnp.float32),
        # no grid: every operand fits comfortably in VMEM as a single full block
        in_specs=[pl.BlockSpec(memory_space=pltpu.MemorySpace.VMEM)] * 8,
        out_specs=pl.BlockSpec(memory_space=pltpu.MemorySpace.VMEM),
    )(x2d,
      kparams["wih0"], kparams["whh0"], kparams["b0"],
      kparams["w1"], kparams["b1"],
      kparams["wfc"], kparams["bfc"])
    return out[:B]


def init_params(key):
    """Deterministic init mirroring PyTorch's U(-1/sqrt(H), 1/sqrt(H)) for LSTM/Linear.

    Canonical (un-fused) layout, PyTorch gate order (i, f, g, o).
    """
    bound = 1.0 / jnp.sqrt(jnp.float32(HIDDEN))
    keys = jax.random.split(key, 10)

    def u(k, shape):
        return jax.random.uniform(k, shape, jnp.float32, -bound, bound)

    return dict(
        wih0=u(keys[0], (INPUT, 4 * HIDDEN)),
        whh0=u(keys[1], (HIDDEN, 4 * HIDDEN)),
        b0=u(keys[2], (1, 4 * HIDDEN)) + u(keys[3], (1, 4 * HIDDEN)),   # b_ih_l0 + b_hh_l0
        wih1=u(keys[4], (HIDDEN, 4 * HIDDEN)),
        whh1=u(keys[5], (HIDDEN, 4 * HIDDEN)),
        b1=u(keys[6], (1, 4 * HIDDEN)) + u(keys[7], (1, 4 * HIDDEN)),   # b_ih_l1 + b_hh_l1
        wfc=u(keys[8], (HIDDEN, OUTPUT)),
        bfc=u(keys[9], (1, OUTPUT)),
    )


def prepare_kernel_params(p):
    """Fuse layer-1's input/recurrent weights into one (2H, 4H) matrix for the kernel."""
    return dict(
        wih0=p["wih0"], whh0=p["whh0"], b0=p["b0"],
        w1=jnp.concatenate([p["wih1"], p["whh1"]], axis=0),   # (2H, 4H): [wih1; whh1]
        b1=p["b1"], wfc=p["wfc"], bfc=p["bfc"],
    )


def reference_forward(x, p):
    """Pure-JAX f32 reference of the same forward pass (for correctness check)."""
    B, T, _ = x.shape
    H = HIDDEN

    def cell(x_t, h, c, wih, whh, b):
        gates = x_t @ wih + h @ whh + b
        i = jax.nn.sigmoid(gates[:, 0:H])
        f = jax.nn.sigmoid(gates[:, H:2 * H])
        g = jnp.tanh(gates[:, 2 * H:3 * H])
        o = jax.nn.sigmoid(gates[:, 3 * H:4 * H])
        c = f * c + i * g
        return o * jnp.tanh(c), c

    h0 = c0 = h1 = c1 = jnp.zeros((B, H), jnp.float32)
    for t in range(T):
        h0, c0 = cell(x[:, t], h0, c0, p["wih0"], p["whh0"], p["b0"])
        h1, c1 = cell(h0, h1, c1, p["wih1"], p["whh1"], p["b1"])
    logits = h1 @ p["wfc"] + p["bfc"]
    return jax.nn.softmax(logits, axis=1)


if __name__ == "__main__":
    key = jax.random.PRNGKey(0)
    k_param, k_x = jax.random.split(key)

    B, T = 2, 8                                   # small batch, short sequence
    x = jax.random.normal(k_x, (B, T, INPUT), jnp.float32)
    params = init_params(k_param)
    kparams = prepare_kernel_params(params)

    out = hand_orientation_forward(x, kparams)
    out = jax.block_until_ready(out)

    ref = reference_forward(x, params)
    assert out.shape == (B, OUTPUT)
    # bf16 MXU inputs + approx reciprocal => compare against the f32 reference loosely.
    assert jnp.allclose(jnp.sum(out, axis=1), 1.0, atol=1e-2)
    assert jnp.allclose(out, ref, atol=2e-2, rtol=0.0), (out, ref)

    print("KERNEL_OK")
</pallas_src>

<mosaic_0001>
module attributes {stable_mosaic.version = 11 : i64} {
  func.func @lstm_fc_softmax_kernel(%arg0: memref<64x42xf32, #tpu.memory_space<vmem>>, %arg1: memref<42x256xf32, #tpu.memory_space<vmem>>, %arg2: memref<64x256xf32, #tpu.memory_space<vmem>>, %arg3: memref<1x256xf32, #tpu.memory_space<vmem>>, %arg4: memref<128x256xf32, #tpu.memory_space<vmem>>, %arg5: memref<1x256xf32, #tpu.memory_space<vmem>>, %arg6: memref<64x5xf32, #tpu.memory_space<vmem>>, %arg7: memref<1x5xf32, #tpu.memory_space<vmem>>, %arg8: memref<8x5xf32, #tpu.memory_space<vmem>>) attributes {dimension_semantics = [], scalar_prefetch = 0 : i64, scratch_operands = 0 : i64, tpu.core_type = #tpu.core_type<tc>} {
    %c0 = arith.constant 0 : index
    %c0_0 = arith.constant 0 : index
    %0 = vector.load %arg1[%c0, %c0_0] : memref<42x256xf32, #tpu.memory_space<vmem>>, vector<42x256xf32>
    %1 = arith.truncf %0 : vector<42x256xf32> to vector<42x256xbf16>
    %c0_1 = arith.constant 0 : index
    %c0_2 = arith.constant 0 : index
    %2 = vector.load %arg2[%c0_1, %c0_2] : memref<64x256xf32, #tpu.memory_space<vmem>>, vector<64x256xf32>
    %3 = arith.truncf %2 : vector<64x256xf32> to vector<64x256xbf16>
    %c0_3 = arith.constant 0 : index
    %c0_4 = arith.constant 0 : index
    %4 = vector.load %arg4[%c0_3, %c0_4] : memref<128x256xf32, #tpu.memory_space<vmem>>, vector<128x256xf32>
    %5 = arith.truncf %4 : vector<128x256xf32> to vector<128x256xbf16>
    %c0_5 = arith.constant 0 : index
    %c0_6 = arith.constant 0 : index
    %6 = vector.load %arg0[%c0_5, %c0_6] : memref<64x42xf32, #tpu.memory_space<vmem>>, vector<64x42xf32>
    %7 = arith.truncf %6 : vector<64x42xf32> to vector<64x42xbf16>
    %cst = arith.constant dense<0.000000e+00> : vector<64x256xf32>
    %8 = tpu.matmul %7, %1, %cst {dimension_numbers = #tpu.dot_dimension_numbers<[1], [0], [0], [1], [0, 0, 1, 1], [], []>} : vector<64x42xbf16>, vector<42x256xbf16>, vector<64x256xf32> -> vector<64x256xf32>
    %c0_7 = arith.constant 0 : index
    %c0_8 = arith.constant 0 : index
    %9 = vector.load %arg3[%c0_7, %c0_8] : memref<1x256xf32, #tpu.memory_space<vmem>>, vector<1x256xf32>
    %10 = vector.broadcast %9 : vector<1x256xf32> to vector<64x256xf32>
    %11 = arith.addf %8, %10 : vector<64x256xf32>
    %c0_9 = arith.constant 0 : index
    %c0_10 = arith.constant 0 : index
    %12 = vector.load %arg5[%c0_9, %c0_10] : memref<1x256xf32, #tpu.memory_space<vmem>>, vector<1x256xf32>
    %13 = vector.shape_cast %12 : vector<1x256xf32> to vector<1x256xf32>
    %14 = vector.broadcast %13 : vector<1x256xf32> to vector<8x256xf32>
    %cst_11 = arith.constant 0.000000e+00 : f32
    %15 = vector.broadcast %cst_11 : f32 to vector<8x64xf32>
    %cst_12 = arith.constant 0.000000e+00 : f32
    %16 = vector.broadcast %cst_12 : f32 to vector<8x64xf32>
    %cst_13 = arith.constant 0.000000e+00 : f32
    %17 = vector.broadcast %cst_13 : f32 to vector<8x64xf32>
    %cst_14 = arith.constant 0.000000e+00 : f32
    %18 = vector.broadcast %cst_14 : f32 to vector<8x64xf32>
    %19 = vector.extract_strided_slice %11 {offsets = [0, 0], sizes = [8, 256], strides = [1, 1]} : vector<64x256xf32> to vector<8x256xf32>
    %20 = arith.truncf %15 : vector<8x64xf32> to vector<8x64xbf16>
    %cst_15 = arith.constant dense<0.000000e+00> : vector<8x256xf32>
    %21 = tpu.matmul %20, %3, %cst_15 {dimension_numbers = #tpu.dot_dimension_numbers<[1], [0], [0], [1], [0, 0, 1, 1], [], []>} : vector<8x64xbf16>, vector<64x256xbf16>, vector<8x256xf32> -> vector<8x256xf32>
    %22 = arith.addf %19, %21 : vector<8x256xf32>
    %23 = vector.extract_strided_slice %22 {offsets = [0, 0], sizes = [8, 64], strides = [1, 1]} : vector<8x256xf32> to vector<8x64xf32>
    %24 = arith.negf %23 : vector<8x64xf32>
    %25 = math.exp %24 : vector<8x64xf32>
    %cst_16 = arith.constant 1.000000e+00 : f32
    %26 = vector.broadcast %cst_16 : f32 to vector<8x64xf32>
    %27 = arith.addf %26, %25 : vector<8x64xf32>
    %28 = arith.divf %26, %27 : vector<8x64xf32>
    %29 = vector.extract_strided_slice %22 {offsets = [0, 64], sizes = [8, 64], strides = [1, 1]} : vector<8x256xf32> to vector<8x64xf32>
    %30 = arith.negf %29 : vector<8x64xf32>
    %31 = math.exp %30 : vector<8x64xf32>
    %cst_17 = arith.constant 1.000000e+00 : f32
    %32 = vector.broadcast %cst_17 : f32 to vector<8x64xf32>
    %33 = arith.addf %32, %31 : vector<8x64xf32>
    %34 = arith.divf %32, %33 : vector<8x64xf32>
    %35 = vector.extract_strided_slice %22 {offsets = [0, 128], sizes = [8, 64], strides = [1, 1]} : vector<8x256xf32> to vector<8x64xf32>
    %36 = math.tanh %35 : vector<8x64xf32>
    %37 = vector.extract_strided_slice %22 {offsets = [0, 192], sizes = [8, 64], strides = [1, 1]} : vector<8x256xf32> to vector<8x64xf32>
    %38 = arith.negf %37 : vector<8x64xf32>
    %39 = math.exp %38 : vector<8x64xf32>
    %cst_18 = arith.constant 1.000000e+00 : f32
    %40 = vector.broadcast %cst_18 : f32 to vector<8x64xf32>
    %41 = arith.addf %40, %39 : vector<8x64xf32>
    %42 = arith.divf %40, %41 : vector<8x64xf32>
    %43 = arith.mulf %34, %16 : vector<8x64xf32>
    %44 = arith.mulf %28, %36 : vector<8x64xf32>
    %45 = arith.addf %43, %44 : vector<8x64xf32>
    %46 = math.tanh %45 : vector<8x64xf32>
    %47 = arith.mulf %42, %46 : vector<8x64xf32>
    %48 = tpu.concatenate %47, %17 in 1 : vector<8x64xf32>, vector<8x64xf32> -> vector<8x128xf32>
    %49 = arith.truncf %48 : vector<8x128xf32> to vector<8x128xbf16>
    %cst_19 = arith.constant dense<0.000000e+00> : vector<8x256xf32>
    %50 = tpu.matmul %49, %5, %cst_19 {dimension_numbers = #tpu.dot_dimension_numbers<[1], [0], [0], [1], [0, 0, 1, 1], [], []>} : vector<8x128xbf16>, vector<128x256xbf16>, vector<8x256xf32> -> vector<8x256xf32>
    %51 = arith.addf %50, %14 : vector<8x256xf32>
    %52 = vector.extract_strided_slice %51 {offsets = [0, 0], sizes = [8, 64], strides = [1, 1]} : vector<8x256xf32> to vector<8x64xf32>
    %53 = arith.negf %52 : vector<8x64xf32>
    %54 = math.exp %53 : vector<8x64xf32>
    %cst_20 = arith.constant 1.000000e+00 : f32
    %55 = vector.broadcast %cst_20 : f32 to vector<8x64xf32>
    %56 = arith.addf %55, %54 : vector<8x64xf32>
    %57 = arith.divf %55, %56 : vector<8x64xf32>
    %58 = vector.extract_strided_slice %51 {offsets = [0, 64], sizes = [8, 64], strides = [1, 1]} : vector<8x256xf32> to vector<8x64xf32>
    %59 = arith.negf %58 : vector<8x64xf32>
    %60 = math.exp %59 : vector<8x64xf32>
    %cst_21 = arith.constant 1.000000e+00 : f32
    %61 = vector.broadcast %cst_21 : f32 to vector<8x64xf32>
    %62 = arith.addf %61, %60 : vector<8x64xf32>
    %63 = arith.divf %61, %62 : vector<8x64xf32>
    %64 = vector.extract_strided_slice %51 {offsets = [0, 128], sizes = [8, 64], strides = [1, 1]} : vector<8x256xf32> to vector<8x64xf32>
    %65 = math.tanh %64 : vector<8x64xf32>
    %66 = vector.extract_strided_slice %51 {offsets = [0, 192], sizes = [8, 64], strides = [1, 1]} : vector<8x256xf32> to vector<8x64xf32>
    %67 = arith.negf %66 : vector<8x64xf32>
    %68 = math.exp %67 : vector<8x64xf32>
    %cst_22 = arith.constant 1.000000e+00 : f32
    %69 = vector.broadcast %cst_22 : f32 to vector<8x64xf32>
    %70 = arith.addf %69, %68 : vector<8x64xf32>
    %71 = arith.divf %69, %70 : vector<8x64xf32>
    %72 = arith.mulf %63, %18 : vector<8x64xf32>
    %73 = arith.mulf %57, %65 : vector<8x64xf32>
    %74 = arith.addf %72, %73 : vector<8x64xf32>
    %75 = math.tanh %74 : vector<8x64xf32>
    %76 = arith.mulf %71, %75 : vector<8x64xf32>
    %77 = vector.extract_strided_slice %11 {offsets = [8, 0], sizes = [8, 256], strides = [1, 1]} : vector<64x256xf32> to vector<8x256xf32>
    %78 = arith.truncf %47 : vector<8x64xf32> to vector<8x64xbf16>
    %cst_23 = arith.constant dense<0.000000e+00> : vector<8x256xf32>
    %79 = tpu.matmul %78, %3, %cst_23 {dimension_numbers = #tpu.dot_dimension_numbers<[1], [0], [0], [1], [0, 0, 1, 1], [], []>} : vector<8x64xbf16>, vector<64x256xbf16>, vector<8x256xf32> -> vector<8x256xf32>
    %80 = arith.addf %77, %79 : vector<8x256xf32>
    %81 = vector.extract_strided_slice %80 {offsets = [0, 0], sizes = [8, 64], strides = [1, 1]} : vector<8x256xf32> to vector<8x64xf32>
    %82 = arith.negf %81 : vector<8x64xf32>
    %83 = math.exp %82 : vector<8x64xf32>
    %cst_24 = arith.constant 1.000000e+00 : f32
    %84 = vector.broadcast %cst_24 : f32 to vector<8x64xf32>
    %85 = arith.addf %84, %83 : vector<8x64xf32>
    %86 = arith.divf %84, %85 : vector<8x64xf32>
    %87 = vector.extract_strided_slice %80 {offsets = [0, 64], sizes = [8, 64], strides = [1, 1]} : vector<8x256xf32> to vector<8x64xf32>
    %88 = arith.negf %87 : vector<8x64xf32>
    %89 = math.exp %88 : vector<8x64xf32>
    %cst_25 = arith.constant 1.000000e+00 : f32
    %90 = vector.broadcast %cst_25 : f32 to vector<8x64xf32>
    %91 = arith.addf %90, %89 : vector<8x64xf32>
    %92 = arith.divf %90, %91 : vector<8x64xf32>
    %93 = vector.extract_strided_slice %80 {offsets = [0, 128], sizes = [8, 64], strides = [1, 1]} : vector<8x256xf32> to vector<8x64xf32>
    %94 = math.tanh %93 : vector<8x64xf32>
    %95 = vector.extract_strided_slice %80 {offsets = [0, 192], sizes = [8, 64], strides = [1, 1]} : vector<8x256xf32> to vector<8x64xf32>
    %96 = arith.negf %95 : vector<8x64xf32>
    %97 = math.exp %96 : vector<8x64xf32>
    %cst_26 = arith.constant 1.000000e+00 : f32
    %98 = vector.broadcast %cst_26 : f32 to vector<8x64xf32>
    %99 = arith.addf %98, %97 : vector<8x64xf32>
    %100 = arith.divf %98, %99 : vector<8x64xf32>
    %101 = arith.mulf %92, %45 : vector<8x64xf32>
    %102 = arith.mulf %86, %94 : vector<8x64xf32>
    %103 = arith.addf %101, %102 : vector<8x64xf32>
    %104 = math.tanh %103 : vector<8x64xf32>
    %105 = arith.mulf %100, %104 : vector<8x64xf32>
    %106 = tpu.concatenate %105, %76 in 1 : vector<8x64xf32>, vector<8x64xf32> -> vector<8x128xf32>
    %107 = arith.truncf %106 : vector<8x128xf32> to vector<8x128xbf16>
    %cst_27 = arith.constant dense<0.000000e+00> : vector<8x256xf32>
    %108 = tpu.matmul %107, %5, %cst_27 {dimension_numbers = #tpu.dot_dimension_numbers<[1], [0], [0], [1], [0, 0, 1, 1], [], []>} : vector<8x128xbf16>, vector<128x256xbf16>, vector<8x256xf32> -> vector<8x256xf32>
    %109 = arith.addf %108, %14 : vector<8x256xf32>
    %110 = vector.extract_strided_slice %109 {offsets = [0, 0], sizes = [8, 64], strides = [1, 1]} : vector<8x256xf32> to vector<8x64xf32>
    %111 = arith.negf %110 : vector<8x64xf32>
    %112 = math.exp %111 : vector<8x64xf32>
    %cst_28 = arith.constant 1.000000e+00 : f32
    %113 = vector.broadcast %cst_28 : f32 to vector<8x64xf32>
    %114 = arith.addf %113, %112 : vector<8x64xf32>
    %115 = arith.divf %113, %114 : vector<8x64xf32>
    %116 = vector.extract_strided_slice %109 {offsets = [0, 64], sizes = [8, 64], strides = [1, 1]} : vector<8x256xf32> to vector<8x64xf32>
    %117 = arith.negf %116 : vector<8x64xf32>
    %118 = math.exp %117 : vector<8x64xf32>
    %cst_29 = arith.constant 1.000000e+00 : f32
    %119 = vector.broadcast %cst_29 : f32 to vector<8x64xf32>
    %120 = arith.addf %119, %118 : vector<8x64xf32>
    %121 = arith.divf %119, %120 : vector<8x64xf32>
    %122 = vector.extract_strided_slice %109 {offsets = [0, 128], sizes = [8, 64], strides = [1, 1]} : vector<8x256xf32> to vector<8x64xf32>
    %123 = math.tanh %122 : vector<8x64xf32>
    %124 = vector.extract_strided_slice %109 {offsets = [0, 192], sizes = [8, 64], strides = [1, 1]} : vector<8x256xf32> to vector<8x64xf32>
    %125 = arith.negf %124 : vector<8x64xf32>
    %126 = math.exp %125 : vector<8x64xf32>
    %cst_30 = arith.constant 1.000000e+00 : f32
    %127 = vector.broadcast %cst_30 : f32 to vector<8x64xf32>
    %128 = arith.addf %127, %126 : vector<8x64xf32>
    %129 = arith.divf %127, %128 : vector<8x64xf32>
    %130 = arith.mulf %121, %74 : vector<8x64xf32>
    %131 = arith.mulf %115, %123 : vector<8x64xf32>
    %132 = arith.addf %130, %131 : vector<8x64xf32>
    %133 = math.tanh %132 : vector<8x64xf32>
    %134 = arith.mulf %129, %133 : vector<8x64xf32>
    %135 = vector.extract_strided_slice %11 {offsets = [16, 0], sizes = [8, 256], strides = [1, 1]} : vector<64x256xf32> to vector<8x256xf32>
    %136 = arith.truncf %105 : vector<8x64xf32> to vector<8x64xbf16>
    %cst_31 = arith.constant dense<0.000000e+00> : vector<8x256xf32>
    %137 = tpu.matmul %136, %3, %cst_31 {dimension_numbers = #tpu.dot_dimension_numbers<[1], [0], [0], [1], [0, 0, 1, 1], [], []>} : vector<8x64xbf16>, vector<64x256xbf16>, vector<8x256xf32> -> vector<8x256xf32>
    %138 = arith.addf %135, %137 : vector<8x256xf32>
    %139 = vector.extract_strided_slice %138 {offsets = [0, 0], sizes = [8, 64], strides = [1, 1]} : vector<8x256xf32> to vector<8x64xf32>
    %140 = arith.negf %139 : vector<8x64xf32>
    %141 = math.exp %140 : vector<8x64xf32>
    %cst_32 = arith.constant 1.000000e+00 : f32
    %142 = vector.broadcast %cst_32 : f32 to vector<8x64xf32>
    %143 = arith.addf %142, %141 : vector<8x64xf32>
    %144 = arith.divf %142, %143 : vector<8x64xf32>
    %145 = vector.extract_strided_slice %138 {offsets = [0, 64], sizes = [8, 64], strides = [1, 1]} : vector<8x256xf32> to vector<8x64xf32>
    %146 = arith.negf %145 : vector<8x64xf32>
    %147 = math.exp %146 : vector<8x64xf32>
    %cst_33 = arith.constant 1.000000e+00 : f32
    %148 = vector.broadcast %cst_33 : f32 to vector<8x64xf32>
    %149 = arith.addf %148, %147 : vector<8x64xf32>
    %150 = arith.divf %148, %149 : vector<8x64xf32>
    %151 = vector.extract_strided_slice %138 {offsets = [0, 128], sizes = [8, 64], strides = [1, 1]} : vector<8x256xf32> to vector<8x64xf32>
    %152 = math.tanh %151 : vector<8x64xf32>
    %153 = vector.extract_strided_slice %138 {offsets = [0, 192], sizes = [8, 64], strides = [1, 1]} : vector<8x256xf32> to vector<8x64xf32>
    %154 = arith.negf %153 : vector<8x64xf32>
    %155 = math.exp %154 : vector<8x64xf32>
    %cst_34 = arith.constant 1.000000e+00 : f32
    %156 = vector.broadcast %cst_34 : f32 to vector<8x64xf32>
    %157 = arith.addf %156, %155 : vector<8x64xf32>
    %158 = arith.divf %156, %157 : vector<8x64xf32>
    %159 = arith.mulf %150, %103 : vector<8x64xf32>
    %160 = arith.mulf %144, %152 : vector<8x64xf32>
    %161 = arith.addf %159, %160 : vector<8x64xf32>
    %162 = math.tanh %161 : vector<8x64xf32>
    %163 = arith.mulf %158, %162 : vector<8x64xf32>
    %164 = tpu.concatenate %163, %134 in 1 : vector<8x64xf32>, vector<8x64xf32> -> vector<8x128xf32>
    %165 = arith.truncf %164 : vector<8x128xf32> to vector<8x128xbf16>
    %cst_35 = arith.constant dense<0.000000e+00> : vector<8x256xf32>
    %166 = tpu.matmul %165, %5, %cst_35 {dimension_numbers = #tpu.dot_dimension_numbers<[1], [0], [0], [1], [0, 0, 1, 1], [], []>} : vector<8x128xbf16>, vector<128x256xbf16>, vector<8x256xf32> -> vector<8x256xf32>
    %167 = arith.addf %166, %14 : vector<8x256xf32>
    %168 = vector.extract_strided_slice %167 {offsets = [0, 0], sizes = [8, 64], strides = [1, 1]} : vector<8x256xf32> to vector<8x64xf32>
    %169 = arith.negf %168 : vector<8x64xf32>
    %170 = math.exp %169 : vector<8x64xf32>
    %cst_36 = arith.constant 1.000000e+00 : f32
    %171 = vector.broadcast %cst_36 : f32 to vector<8x64xf32>
    %172 = arith.addf %171, %170 : vector<8x64xf32>
    %173 = arith.divf %171, %172 : vector<8x64xf32>
    %174 = vector.extract_strided_slice %167 {offsets = [0, 64], sizes = [8, 64], strides = [1, 1]} : vector<8x256xf32> to vector<8x64xf32>
    %175 = arith.negf %174 : vector<8x64xf32>
    %176 = math.exp %175 : vector<8x64xf32>
    %cst_37 = arith.constant 1.000000e+00 : f32
    %177 = vector.broadcast %cst_37 : f32 to vector<8x64xf32>
    %178 = arith.addf %177, %176 : vector<8x64xf32>
    %179 = arith.divf %177, %178 : vector<8x64xf32>
    %180 = vector.extract_strided_slice %167 {offsets = [0, 128], sizes = [8, 64], strides = [1, 1]} : vector<8x256xf32> to vector<8x64xf32>
    %181 = math.tanh %180 : vector<8x64xf32>
    %182 = vector.extract_strided_slice %167 {offsets = [0, 192], sizes = [8, 64], strides = [1, 1]} : vector<8x256xf32> to vector<8x64xf32>
    %183 = arith.negf %182 : vector<8x64xf32>
    %184 = math.exp %183 : vector<8x64xf32>
    %cst_38 = arith.constant 1.000000e+00 : f32
    %185 = vector.broadcast %cst_38 : f32 to vector<8x64xf32>
    %186 = arith.addf %185, %184 : vector<8x64xf32>
    %187 = arith.divf %185, %186 : vector<8x64xf32>
    %188 = arith.mulf %179, %132 : vector<8x64xf32>
    %189 = arith.mulf %173, %181 : vector<8x64xf32>
    %190 = arith.addf %188, %189 : vector<8x64xf32>
    %191 = math.tanh %190 : vector<8x64xf32>
    %192 = arith.mulf %187, %191 : vector<8x64xf32>
    %193 = vector.extract_strided_slice %11 {offsets = [24, 0], sizes = [8, 256], strides = [1, 1]} : vector<64x256xf32> to vector<8x256xf32>
    %194 = arith.truncf %163 : vector<8x64xf32> to vector<8x64xbf16>
    %cst_39 = arith.constant dense<0.000000e+00> : vector<8x256xf32>
    %195 = tpu.matmul %194, %3, %cst_39 {dimension_numbers = #tpu.dot_dimension_numbers<[1], [0], [0], [1], [0, 0, 1, 1], [], []>} : vector<8x64xbf16>, vector<64x256xbf16>, vector<8x256xf32> -> vector<8x256xf32>
    %196 = arith.addf %193, %195 : vector<8x256xf32>
    %197 = vector.extract_strided_slice %196 {offsets = [0, 0], sizes = [8, 64], strides = [1, 1]} : vector<8x256xf32> to vector<8x64xf32>
    %198 = arith.negf %197 : vector<8x64xf32>
    %199 = math.exp %198 : vector<8x64xf32>
    %cst_40 = arith.constant 1.000000e+00 : f32
    %200 = vector.broadcast %cst_40 : f32 to vector<8x64xf32>
    %201 = arith.addf %200, %199 : vector<8x64xf32>
    %202 = arith.divf %200, %201 : vector<8x64xf32>
    %203 = vector.extract_strided_slice %196 {offsets = [0, 64], sizes = [8, 64], strides = [1, 1]} : vector<8x256xf32> to vector<8x64xf32>
    %204 = arith.negf %203 : vector<8x64xf32>
    %205 = math.exp %204 : vector<8x64xf32>
    %cst_41 = arith.constant 1.000000e+00 : f32
    %206 = vector.broadcast %cst_41 : f32 to vector<8x64xf32>
    %207 = arith.addf %206, %205 : vector<8x64xf32>
    %208 = arith.divf %206, %207 : vector<8x64xf32>
    %209 = vector.extract_strided_slice %196 {offsets = [0, 128], sizes = [8, 64], strides = [1, 1]} : vector<8x256xf32> to vector<8x64xf32>
    %210 = math.tanh %209 : vector<8x64xf32>
    %211 = vector.extract_strided_slice %196 {offsets = [0, 192], sizes = [8, 64], strides = [1, 1]} : vector<8x256xf32> to vector<8x64xf32>
    %212 = arith.negf %211 : vector<8x64xf32>
    %213 = math.exp %212 : vector<8x64xf32>
    %cst_42 = arith.constant 1.000000e+00 : f32
    %214 = vector.broadcast %cst_42 : f32 to vector<8x64xf32>
    %215 = arith.addf %214, %213 : vector<8x64xf32>
    %216 = arith.divf %214, %215 : vector<8x64xf32>
    %217 = arith.mulf %208, %161 : vector<8x64xf32>
    %218 = arith.mulf %202, %210 : vector<8x64xf32>
    %219 = arith.addf %217, %218 : vector<8x64xf32>
    %220 = math.tanh %219 : vector<8x64xf32>
    %221 = arith.mulf %216, %220 : vector<8x64xf32>
    %222 = tpu.concatenate %221, %192 in 1 : vector<8x64xf32>, vector<8x64xf32> -> vector<8x128xf32>
    %223 = arith.truncf %222 : vector<8x128xf32> to vector<8x128xbf16>
    %cst_43 = arith.constant dense<0.000000e+00> : vector<8x256xf32>
    %224 = tpu.matmul %223, %5, %cst_43 {dimension_numbers = #tpu.dot_dimension_numbers<[1], [0], [0], [1], [0, 0, 1, 1], [], []>} : vector<8x128xbf16>, vector<128x256xbf16>, vector<8x256xf32> -> vector<8x256xf32>
    %225 = arith.addf %224, %14 : vector<8x256xf32>
    %226 = vector.extract_strided_slice %225 {offsets = [0, 0], sizes = [8, 64], strides = [1, 1]} : vector<8x256xf32> to vector<8x64xf32>
    %227 = arith.negf %226 : vector<8x64xf32>
    %228 = math.exp %227 : vector<8x64xf32>
    %cst_44 = arith.constant 1.000000e+00 : f32
    %229 = vector.broadcast %cst_44 : f32 to vector<8x64xf32>
    %230 = arith.addf %229, %228 : vector<8x64xf32>
    %231 = arith.divf %229, %230 : vector<8x64xf32>
    %232 = vector.extract_strided_slice %225 {offsets = [0, 64], sizes = [8, 64], strides = [1, 1]} : vector<8x256xf32> to vector<8x64xf32>
    %233 = arith.negf %232 : vector<8x64xf32>
    %234 = math.exp %233 : vector<8x64xf32>
    %cst_45 = arith.constant 1.000000e+00 : f32
    %235 = vector.broadcast %cst_45 : f32 to vector<8x64xf32>
    %236 = arith.addf %235, %234 : vector<8x64xf32>
    %237 = arith.divf %235, %236 : vector<8x64xf32>
    %238 = vector.extract_strided_slice %225 {offsets = [0, 128], sizes = [8, 64], strides = [1, 1]} : vector<8x256xf32> to vector<8x64xf32>
    %239 = math.tanh %238 : vector<8x64xf32>
    %240 = vector.extract_strided_slice %225 {offsets = [0, 192], sizes = [8, 64], strides = [1, 1]} : vector<8x256xf32> to vector<8x64xf32>
    %241 = arith.negf %240 : vector<8x64xf32>
    %242 = math.exp %241 : vector<8x64xf32>
    %cst_46 = arith.constant 1.000000e+00 : f32
    %243 = vector.broadcast %cst_46 : f32 to vector<8x64xf32>
    %244 = arith.addf %243, %242 : vector<8x64xf32>
    %245 = arith.divf %243, %244 : vector<8x64xf32>
    %246 = arith.mulf %237, %190 : vector<8x64xf32>
    %247 = arith.mulf %231, %239 : vector<8x64xf32>
    %248 = arith.addf %246, %247 : vector<8x64xf32>
    %249 = math.tanh %248 : vector<8x64xf32>
    %250 = arith.mulf %245, %249 : vector<8x64xf32>
    %251 = vector.extract_strided_slice %11 {offsets = [32, 0], sizes = [8, 256], strides = [1, 1]} : vector<64x256xf32> to vector<8x256xf32>
    %252 = arith.truncf %221 : vector<8x64xf32> to vector<8x64xbf16>
    %cst_47 = arith.constant dense<0.000000e+00> : vector<8x256xf32>
    %253 = tpu.matmul %252, %3, %cst_47 {dimension_numbers = #tpu.dot_dimension_numbers<[1], [0], [0], [1], [0, 0, 1, 1], [], []>} : vector<8x64xbf16>, vector<64x256xbf16>, vector<8x256xf32> -> vector<8x256xf32>
    %254 = arith.addf %251, %253 : vector<8x256xf32>
    %255 = vector.extract_strided_slice %254 {offsets = [0, 0], sizes = [8, 64], strides = [1, 1]} : vector<8x256xf32> to vector<8x64xf32>
    %256 = arith.negf %255 : vector<8x64xf32>
    %257 = math.exp %256 : vector<8x64xf32>
    %cst_48 = arith.constant 1.000000e+00 : f32
    %258 = vector.broadcast %cst_48 : f32 to vector<8x64xf32>
    %259 = arith.addf %258, %257 : vector<8x64xf32>
    %260 = arith.divf %258, %259 : vector<8x64xf32>
    %261 = vector.extract_strided_slice %254 {offsets = [0, 64], sizes = [8, 64], strides = [1, 1]} : vector<8x256xf32> to vector<8x64xf32>
    %262 = arith.negf %261 : vector<8x64xf32>
    %263 = math.exp %262 : vector<8x64xf32>
    %cst_49 = arith.constant 1.000000e+00 : f32
    %264 = vector.broadcast %cst_49 : f32 to vector<8x64xf32>
    %265 = arith.addf %264, %263 : vector<8x64xf32>
    %266 = arith.divf %264, %265 : vector<8x64xf32>
    %267 = vector.extract_strided_slice %254 {offsets = [0, 128], sizes = [8, 64], strides = [1, 1]} : vector<8x256xf32> to vector<8x64xf32>
    %268 = math.tanh %267 : vector<8x64xf32>
    %269 = vector.extract_strided_slice %254 {offsets = [0, 192], sizes = [8, 64], strides = [1, 1]} : vector<8x256xf32> to vector<8x64xf32>
    %270 = arith.negf %269 : vector<8x64xf32>
    %271 = math.exp %270 : vector<8x64xf32>
    %cst_50 = arith.constant 1.000000e+00 : f32
    %272 = vector.broadcast %cst_50 : f32 to vector<8x64xf32>
    %273 = arith.addf %272, %271 : vector<8x64xf32>
    %274 = arith.divf %272, %273 : vector<8x64xf32>
    %275 = arith.mulf %266, %219 : vector<8x64xf32>
    %276 = arith.mulf %260, %268 : vector<8x64xf32>
    %277 = arith.addf %275, %276 : vector<8x64xf32>
    %278 = math.tanh %277 : vector<8x64xf32>
    %279 = arith.mulf %274, %278 : vector<8x64xf32>
    %280 = tpu.concatenate %279, %250 in 1 : vector<8x64xf32>, vector<8x64xf32> -> vector<8x128xf32>
    %281 = arith.truncf %280 : vector<8x128xf32> to vector<8x128xbf16>
    %cst_51 = arith.constant dense<0.000000e+00> : vector<8x256xf32>
    %282 = tpu.matmul %281, %5, %cst_51 {dimension_numbers = #tpu.dot_dimension_numbers<[1], [0], [0], [1], [0, 0, 1, 1], [], []>} : vector<8x128xbf16>, vector<128x256xbf16>, vector<8x256xf32> -> vector<8x256xf32>
    %283 = arith.addf %282, %14 : vector<8x256xf32>
    %284 = vector.extract_strided_slice %283 {offsets = [0, 0], sizes = [8, 64], strides = [1, 1]} : vector<8x256xf32> to vector<8x64xf32>
    %285 = arith.negf %284 : vector<8x64xf32>
    %286 = math.exp %285 : vector<8x64xf32>
    %cst_52 = arith.constant 1.000000e+00 : f32
    %287 = vector.broadcast %cst_52 : f32 to vector<8x64xf32>
    %288 = arith.addf %287, %286 : vector<8x64xf32>
    %289 = arith.divf %287, %288 : vector<8x64xf32>
    %290 = vector.extract_strided_slice %283 {offsets = [0, 64], sizes = [8, 64], strides = [1, 1]} : vector<8x256xf32> to vector<8x64xf32>
    %291 = arith.negf %290 : vector<8x64xf32>
    %292 = math.exp %291 : vector<8x64xf32>
    %cst_53 = arith.constant 1.000000e+00 : f32
    %293 = vector.broadcast %cst_53 : f32 to vector<8x64xf32>
    %294 = arith.addf %293, %292 : vector<8x64xf32>
    %295 = arith.divf %293, %294 : vector<8x64xf32>
    %296 = vector.extract_strided_slice %283 {offsets = [0, 128], sizes = [8, 64], strides = [1, 1]} : vector<8x256xf32> to vector<8x64xf32>
    %297 = math.tanh %296 : vector<8x64xf32>
    %298 = vector.extract_strided_slice %283 {offsets = [0, 192], sizes = [8, 64], strides = [1, 1]} : vector<8x256xf32> to vector<8x64xf32>
    %299 = arith.negf %298 : vector<8x64xf32>
    %300 = math.exp %299 : vector<8x64xf32>
    %cst_54 = arith.constant 1.000000e+00 : f32
    %301 = vector.broadcast %cst_54 : f32 to vector<8x64xf32>
    %302 = arith.addf %301, %300 : vector<8x64xf32>
    %303 = arith.divf %301, %302 : vector<8x64xf32>
    %304 = arith.mulf %295, %248 : vector<8x64xf32>
    %305 = arith.mulf %289, %297 : vector<8x64xf32>
    %306 = arith.addf %304, %305 : vector<8x64xf32>
    %307 = math.tanh %306 : vector<8x64xf32>
    %308 = arith.mulf %303, %307 : vector<8x64xf32>
    %309 = vector.extract_strided_slice %11 {offsets = [40, 0], sizes = [8, 256], strides = [1, 1]} : vector<64x256xf32> to vector<8x256xf32>
    %310 = arith.truncf %279 : vector<8x64xf32> to vector<8x64xbf16>
    %cst_55 = arith.constant dense<0.000000e+00> : vector<8x256xf32>
    %311 = tpu.matmul %310, %3, %cst_55 {dimension_numbers = #tpu.dot_dimension_numbers<[1], [0], [0], [1], [0, 0, 1, 1], [], []>} : vector<8x64xbf16>, vector<64x256xbf16>, vector<8x256xf32> -> vector<8x256xf32>
    %312 = arith.addf %309, %311 : vector<8x256xf32>
    %313 = vector.extract_strided_slice %312 {offsets = [0, 0], sizes = [8, 64], strides = [1, 1]} : vector<8x256xf32> to vector<8x64xf32>
    %314 = arith.negf %313 : vector<8x64xf32>
    %315 = math.exp %314 : vector<8x64xf32>
    %cst_56 = arith.constant 1.000000e+00 : f32
    %316 = vector.broadcast %cst_56 : f32 to vector<8x64xf32>
    %317 = arith.addf %316, %315 : vector<8x64xf32>
    %318 = arith.divf %316, %317 : vector<8x64xf32>
    %319 = vector.extract_strided_slice %312 {offsets = [0, 64], sizes = [8, 64], strides = [1, 1]} : vector<8x256xf32> to vector<8x64xf32>
    %320 = arith.negf %319 : vector<8x64xf32>
    %321 = math.exp %320 : vector<8x64xf32>
    %cst_57 = arith.constant 1.000000e+00 : f32
    %322 = vector.broadcast %cst_57 : f32 to vector<8x64xf32>
    %323 = arith.addf %322, %321 : vector<8x64xf32>
    %324 = arith.divf %322, %323 : vector<8x64xf32>
    %325 = vector.extract_strided_slice %312 {offsets = [0, 128], sizes = [8, 64], strides = [1, 1]} : vector<8x256xf32> to vector<8x64xf32>
    %326 = math.tanh %325 : vector<8x64xf32>
    %327 = vector.extract_strided_slice %312 {offsets = [0, 192], sizes = [8, 64], strides = [1, 1]} : vector<8x256xf32> to vector<8x64xf32>
    %328 = arith.negf %327 : vector<8x64xf32>
    %329 = math.exp %328 : vector<8x64xf32>
    %cst_58 = arith.constant 1.000000e+00 : f32
    %330 = vector.broadcast %cst_58 : f32 to vector<8x64xf32>
    %331 = arith.addf %330, %329 : vector<8x64xf32>
    %332 = arith.divf %330, %331 : vector<8x64xf32>
    %333 = arith.mulf %324, %277 : vector<8x64xf32>
    %334 = arith.mulf %318, %326 : vector<8x64xf32>
    %335 = arith.addf %333, %334 : vector<8x64xf32>
    %336 = math.tanh %335 : vector<8x64xf32>
    %337 = arith.mulf %332, %336 : vector<8x64xf32>
    %338 = tpu.concatenate %337, %308 in 1 : vector<8x64xf32>, vector<8x64xf32> -> vector<8x128xf32>
    %339 = arith.truncf %338 : vector<8x128xf32> to vector<8x128xbf16>
    %cst_59 = arith.constant dense<0.000000e+00> : vector<8x256xf32>
    %340 = tpu.matmul %339, %5, %cst_59 {dimension_numbers = #tpu.dot_dimension_numbers<[1], [0], [0], [1], [0, 0, 1, 1], [], []>} : vector<8x128xbf16>, vector<128x256xbf16>, vector<8x256xf32> -> vector<8x256xf32>
    %341 = arith.addf %340, %14 : vector<8x256xf32>
    %342 = vector.extract_strided_slice %341 {offsets = [0, 0], sizes = [8, 64], strides = [1, 1]} : vector<8x256xf32> to vector<8x64xf32>
    %343 = arith.negf %342 : vector<8x64xf32>
    %344 = math.exp %343 : vector<8x64xf32>
    %cst_60 = arith.constant 1.000000e+00 : f32
    %345 = vector.broadcast %cst_60 : f32 to vector<8x64xf32>
    %346 = arith.addf %345, %344 : vector<8x64xf32>
    %347 = arith.divf %345, %346 : vector<8x64xf32>
    %348 = vector.extract_strided_slice %341 {offsets = [0, 64], sizes = [8, 64], strides = [1, 1]} : vector<8x256xf32> to vector<8x64xf32>
    %349 = arith.negf %348 : vector<8x64xf32>
    %350 = math.exp %349 : vector<8x64xf32>
    %cst_61 = arith.constant 1.000000e+00 : f32
    %351 = vector.broadcast %cst_61 : f32 to vector<8x64xf32>
    %352 = arith.addf %351, %350 : vector<8x64xf32>
    %353 = arith.divf %351, %352 : vector<8x64xf32>
    %354 = vector.extract_strided_slice %341 {offsets = [0, 128], sizes = [8, 64], strides = [1, 1]} : vector<8x256xf32> to vector<8x64xf32>
    %355 = math.tanh %354 : vector<8x64xf32>
    %356 = vector.extract_strided_slice %341 {offsets = [0, 192], sizes = [8, 64], strides = [1, 1]} : vector<8x256xf32> to vector<8x64xf32>
    %357 = arith.negf %356 : vector<8x64xf32>
    %358 = math.exp %357 : vector<8x64xf32>
    %cst_62 = arith.constant 1.000000e+00 : f32
    %359 = vector.broadcast %cst_62 : f32 to vector<8x64xf32>
    %360 = arith.addf %359, %358 : vector<8x64xf32>
    %361 = arith.divf %359, %360 : vector<8x64xf32>
    %362 = arith.mulf %353, %306 : vector<8x64xf32>
    %363 = arith.mulf %347, %355 : vector<8x64xf32>
    %364 = arith.addf %362, %363 : vector<8x64xf32>
    %365 = math.tanh %364 : vector<8x64xf32>
    %366 = arith.mulf %361, %365 : vector<8x64xf32>
    %367 = vector.extract_strided_slice %11 {offsets = [48, 0], sizes = [8, 256], strides = [1, 1]} : vector<64x256xf32> to vector<8x256xf32>
    %368 = arith.truncf %337 : vector<8x64xf32> to vector<8x64xbf16>
    %cst_63 = arith.constant dense<0.000000e+00> : vector<8x256xf32>
    %369 = tpu.matmul %368, %3, %cst_63 {dimension_numbers = #tpu.dot_dimension_numbers<[1], [0], [0], [1], [0, 0, 1, 1], [], []>} : vector<8x64xbf16>, vector<64x256xbf16>, vector<8x256xf32> -> vector<8x256xf32>
    %370 = arith.addf %367, %369 : vector<8x256xf32>
    %371 = vector.extract_strided_slice %370 {offsets = [0, 0], sizes = [8, 64], strides = [1, 1]} : vector<8x256xf32> to vector<8x64xf32>
    %372 = arith.negf %371 : vector<8x64xf32>
    %373 = math.exp %372 : vector<8x64xf32>
    %cst_64 = arith.constant 1.000000e+00 : f32
    %374 = vector.broadcast %cst_64 : f32 to vector<8x64xf32>
    %375 = arith.addf %374, %373 : vector<8x64xf32>
    %376 = arith.divf %374, %375 : vector<8x64xf32>
    %377 = vector.extract_strided_slice %370 {offsets = [0, 64], sizes = [8, 64], strides = [1, 1]} : vector<8x256xf32> to vector<8x64xf32>
    %378 = arith.negf %377 : vector<8x64xf32>
    %379 = math.exp %378 : vector<8x64xf32>
    %cst_65 = arith.constant 1.000000e+00 : f32
    %380 = vector.broadcast %cst_65 : f32 to vector<8x64xf32>
    %381 = arith.addf %380, %379 : vector<8x64xf32>
    %382 = arith.divf %380, %381 : vector<8x64xf32>
    %383 = vector.extract_strided_slice %370 {offsets = [0, 128], sizes = [8, 64], strides = [1, 1]} : vector<8x256xf32> to vector<8x64xf32>
    %384 = math.tanh %383 : vector<8x64xf32>
    %385 = vector.extract_strided_slice %370 {offsets = [0, 192], sizes = [8, 64], strides = [1, 1]} : vector<8x256xf32> to vector<8x64xf32>
    %386 = arith.negf %385 : vector<8x64xf32>
    %387 = math.exp %386 : vector<8x64xf32>
    %cst_66 = arith.constant 1.000000e+00 : f32
    %388 = vector.broadcast %cst_66 : f32 to vector<8x64xf32>
    %389 = arith.addf %388, %387 : vector<8x64xf32>
    %390 = arith.divf %388, %389 : vector<8x64xf32>
    %391 = arith.mulf %382, %335 : vector<8x64xf32>
    %392 = arith.mulf %376, %384 : vector<8x64xf32>
    %393 = arith.addf %391, %392 : vector<8x64xf32>
    %394 = math.tanh %393 : vector<8x64xf32>
    %395 = arith.mulf %390, %394 : vector<8x64xf32>
    %396 = tpu.concatenate %395, %366 in 1 : vector<8x64xf32>, vector<8x64xf32> -> vector<8x128xf32>
    %397 = arith.truncf %396 : vector<8x128xf32> to vector<8x128xbf16>
    %cst_67 = arith.constant dense<0.000000e+00> : vector<8x256xf32>
    %398 = tpu.matmul %397, %5, %cst_67 {dimension_numbers = #tpu.dot_dimension_numbers<[1], [0], [0], [1], [0, 0, 1, 1], [], []>} : vector<8x128xbf16>, vector<128x256xbf16>, vector<8x256xf32> -> vector<8x256xf32>
    %399 = arith.addf %398, %14 : vector<8x256xf32>
    %400 = vector.extract_strided_slice %399 {offsets = [0, 0], sizes = [8, 64], strides = [1, 1]} : vector<8x256xf32> to vector<8x64xf32>
    %401 = arith.negf %400 : vector<8x64xf32>
    %402 = math.exp %401 : vector<8x64xf32>
    %cst_68 = arith.constant 1.000000e+00 : f32
    %403 = vector.broadcast %cst_68 : f32 to vector<8x64xf32>
    %404 = arith.addf %403, %402 : vector<8x64xf32>
    %405 = arith.divf %403, %404 : vector<8x64xf32>
    %406 = vector.extract_strided_slice %399 {offsets = [0, 64], sizes = [8, 64], strides = [1, 1]} : vector<8x256xf32> to vector<8x64xf32>
    %407 = arith.negf %406 : vector<8x64xf32>
    %408 = math.exp %407 : vector<8x64xf32>
    %cst_69 = arith.constant 1.000000e+00 : f32
    %409 = vector.broadcast %cst_69 : f32 to vector<8x64xf32>
    %410 = arith.addf %409, %408 : vector<8x64xf32>
    %411 = arith.divf %409, %410 : vector<8x64xf32>
    %412 = vector.extract_strided_slice %399 {offsets = [0, 128], sizes = [8, 64], strides = [1, 1]} : vector<8x256xf32> to vector<8x64xf32>
    %413 = math.tanh %412 : vector<8x64xf32>
    %414 = vector.extract_strided_slice %399 {offsets = [0, 192], sizes = [8, 64], strides = [1, 1]} : vector<8x256xf32> to vector<8x64xf32>
    %415 = arith.negf %414 : vector<8x64xf32>
    %416 = math.exp %415 : vector<8x64xf32>
    %cst_70 = arith.constant 1.000000e+00 : f32
    %417 = vector.broadcast %cst_70 : f32 to vector<8x64xf32>
    %418 = arith.addf %417, %416 : vector<8x64xf32>
    %419 = arith.divf %417, %418 : vector<8x64xf32>
    %420 = arith.mulf %411, %364 : vector<8x64xf32>
    %421 = arith.mulf %405, %413 : vector<8x64xf32>
    %422 = arith.addf %420, %421 : vector<8x64xf32>
    %423 = math.tanh %422 : vector<8x64xf32>
    %424 = arith.mulf %419, %423 : vector<8x64xf32>
    %425 = vector.extract_strided_slice %11 {offsets = [56, 0], sizes = [8, 256], strides = [1, 1]} : vector<64x256xf32> to vector<8x256xf32>
    %426 = arith.truncf %395 : vector<8x64xf32> to vector<8x64xbf16>
    %cst_71 = arith.constant dense<0.000000e+00> : vector<8x256xf32>
    %427 = tpu.matmul %426, %3, %cst_71 {dimension_numbers = #tpu.dot_dimension_numbers<[1], [0], [0], [1], [0, 0, 1, 1], [], []>} : vector<8x64xbf16>, vector<64x256xbf16>, vector<8x256xf32> -> vector<8x256xf32>
    %428 = arith.addf %425, %427 : vector<8x256xf32>
    %429 = vector.extract_strided_slice %428 {offsets = [0, 0], sizes = [8, 64], strides = [1, 1]} : vector<8x256xf32> to vector<8x64xf32>
    %430 = arith.negf %429 : vector<8x64xf32>
    %431 = math.exp %430 : vector<8x64xf32>
    %cst_72 = arith.constant 1.000000e+00 : f32
    %432 = vector.broadcast %cst_72 : f32 to vector<8x64xf32>
    %433 = arith.addf %432, %431 : vector<8x64xf32>
    %434 = arith.divf %432, %433 : vector<8x64xf32>
    %435 = vector.extract_strided_slice %428 {offsets = [0, 64], sizes = [8, 64], strides = [1, 1]} : vector<8x256xf32> to vector<8x64xf32>
    %436 = arith.negf %435 : vector<8x64xf32>
    %437 = math.exp %436 : vector<8x64xf32>
    %cst_73 = arith.constant 1.000000e+00 : f32
    %438 = vector.broadcast %cst_73 : f32 to vector<8x64xf32>
    %439 = arith.addf %438, %437 : vector<8x64xf32>
    %440 = arith.divf %438, %439 : vector<8x64xf32>
    %441 = vector.extract_strided_slice %428 {offsets = [0, 128], sizes = [8, 64], strides = [1, 1]} : vector<8x256xf32> to vector<8x64xf32>
    %442 = math.tanh %441 : vector<8x64xf32>
    %443 = vector.extract_strided_slice %428 {offsets = [0, 192], sizes = [8, 64], strides = [1, 1]} : vector<8x256xf32> to vector<8x64xf32>
    %444 = arith.negf %443 : vector<8x64xf32>
    %445 = math.exp %444 : vector<8x64xf32>
    %cst_74 = arith.constant 1.000000e+00 : f32
    %446 = vector.broadcast %cst_74 : f32 to vector<8x64xf32>
    %447 = arith.addf %446, %445 : vector<8x64xf32>
    %448 = arith.divf %446, %447 : vector<8x64xf32>
    %449 = arith.mulf %440, %393 : vector<8x64xf32>
    %450 = arith.mulf %434, %442 : vector<8x64xf32>
    %451 = arith.addf %449, %450 : vector<8x64xf32>
    %452 = math.tanh %451 : vector<8x64xf32>
    %453 = arith.mulf %448, %452 : vector<8x64xf32>
    %454 = tpu.concatenate %453, %424 in 1 : vector<8x64xf32>, vector<8x64xf32> -> vector<8x128xf32>
    %455 = arith.truncf %454 : vector<8x128xf32> to vector<8x128xbf16>
    %cst_75 = arith.constant dense<0.000000e+00> : vector<8x256xf32>
    %456 = tpu.matmul %455, %5, %cst_75 {dimension_numbers = #tpu.dot_dimension_numbers<[1], [0], [0], [1], [0, 0, 1, 1], [], []>} : vector<8x128xbf16>, vector<128x256xbf16>, vector<8x256xf32> -> vector<8x256xf32>
    %457 = arith.addf %456, %14 : vector<8x256xf32>
    %458 = vector.extract_strided_slice %457 {offsets = [0, 0], sizes = [8, 64], strides = [1, 1]} : vector<8x256xf32> to vector<8x64xf32>
    %459 = arith.negf %458 : vector<8x64xf32>
    %460 = math.exp %459 : vector<8x64xf32>
    %cst_76 = arith.constant 1.000000e+00 : f32
    %461 = vector.broadcast %cst_76 : f32 to vector<8x64xf32>
    %462 = arith.addf %461, %460 : vector<8x64xf32>
    %463 = arith.divf %461, %462 : vector<8x64xf32>
    %464 = vector.extract_strided_slice %457 {offsets = [0, 64], sizes = [8, 64], strides = [1, 1]} : vector<8x256xf32> to vector<8x64xf32>
    %465 = arith.negf %464 : vector<8x64xf32>
    %466 = math.exp %465 : vector<8x64xf32>
    %cst_77 = arith.constant 1.000000e+00 : f32
    %467 = vector.broadcast %cst_77 : f32 to vector<8x64xf32>
    %468 = arith.addf %467, %466 : vector<8x64xf32>
    %469 = arith.divf %467, %468 : vector<8x64xf32>
    %470 = vector.extract_strided_slice %457 {offsets = [0, 128], sizes = [8, 64], strides = [1, 1]} : vector<8x256xf32> to vector<8x64xf32>
    %471 = math.tanh %470 : vector<8x64xf32>
    %472 = vector.extract_strided_slice %457 {offsets = [0, 192], sizes = [8, 64], strides = [1, 1]} : vector<8x256xf32> to vector<8x64xf32>
    %473 = arith.negf %472 : vector<8x64xf32>
    %474 = math.exp %473 : vector<8x64xf32>
    %cst_78 = arith.constant 1.000000e+00 : f32
    %475 = vector.broadcast %cst_78 : f32 to vector<8x64xf32>
    %476 = arith.addf %475, %474 : vector<8x64xf32>
    %477 = arith.divf %475, %476 : vector<8x64xf32>
    %478 = arith.mulf %469, %422 : vector<8x64xf32>
    %479 = arith.mulf %463, %471 : vector<8x64xf32>
    %480 = arith.addf %478, %479 : vector<8x64xf32>
    %481 = math.tanh %480 : vector<8x64xf32>
    %482 = arith.mulf %477, %481 : vector<8x64xf32>
    %c0_79 = arith.constant 0 : index
    %c0_80 = arith.constant 0 : index
    %483 = vector.load %arg6[%c0_79, %c0_80] : memref<64x5xf32, #tpu.memory_space<vmem>>, vector<64x5xf32>
    %cst_81 = arith.constant dense<0.000000e+00> : vector<8x5xf32>
    %484 = tpu.matmul %482, %483, %cst_81 {dimension_numbers = #tpu.dot_dimension_numbers<[1], [0], [0], [1], [0, 0, 1, 1], [], []>} : vector<8x64xf32>, vector<64x5xf32>, vector<8x5xf32> -> vector<8x5xf32>
    %c0_82 = arith.constant 0 : index
    %c0_83 = arith.constant 0 : index
    %485 = vector.load %arg7[%c0_82, %c0_83] : memref<1x5xf32, #tpu.memory_space<vmem>>, vector<1x5xf32>
    %486 = vector.broadcast %485 : vector<1x5xf32> to vector<8x5xf32>
    %487 = arith.addf %484, %486 : vector<8x5xf32>
    %cst_84 = arith.constant dense<0xFF800000> : vector<8xf32>
    %488 = vector.multi_reduction <maximumf>, %487, %cst_84 [1] : vector<8x5xf32> to vector<8xf32>
    %489 = vector.shape_cast %488 : vector<8xf32> to vector<8x1xf32>
    %490 = vector.broadcast %489 : vector<8x1xf32> to vector<8x5xf32>
    %491 = arith.subf %487, %490 : vector<8x5xf32>
    %492 = math.exp %491 : vector<8x5xf32>
    %cst_85 = arith.constant dense<0.000000e+00> : vector<8xf32>
    %493 = vector.multi_reduction <add>, %492, %cst_85 [1] : vector<8x5xf32> to vector<8xf32>
    %494 = vector.shape_cast %493 : vector<8xf32> to vector<8x1xf32>
    %495 = tpu.reciprocal %494 {approx = true} : vector<8x1xf32> -> vector<8x1xf32>
    %496 = vector.broadcast %495 : vector<8x1xf32> to vector<8x5xf32>
    %497 = arith.mulf %492, %496 : vector<8x5xf32>
    %c0_86 = arith.constant 0 : index
    %c0_87 = arith.constant 0 : index
    %498 = vector.load %arg8[%c0_86, %c0_87] : memref<8x5xf32, #tpu.memory_space<vmem>>, vector<8x5xf32>
    tpu.vector_store %arg8[%c0_86, %c0_87], %497 {strides = array<i32>} : memref<8x5xf32, #tpu.memory_space<vmem>>, vector<8x5xf32>,
    return
  }
}

</mosaic_0001>

<bundles_post_ra>
// kernel: tpu_custom_call.1
= control target key start
LH: loop header
LB: loop body
LE: loop exit
PB: predicated region body
PF: predicated region fallthrough
CT: control target
= control target key end

     0   :  { %13 = vsyncpa [#allocation3], 0  ;;  %s2622_s0 = inlined_call_operand.vmem [shape: f32[64,42], index: 0, kind: input, shape index: {}]   ;;  %s2623_s1 = inlined_call_operand.hbm [shape: f32[42,256], index: 1, kind: input, shape index: {}]   ;;  %s2624_s2 = inlined_call_operand.vmem [shape: f32[64,256], index: 2, kind: input, shape index: {}]   ;;  %s2625_s3 = inlined_call_operand.vmem [shape: f32[1,256], index: 3, kind: input, shape index: {}]   ;;  %s2626_s4 = inlined_call_operand.hbm [shape: f32[128,256], index: 4, kind: input, shape index: {}]   ;;  %s2627_s5 = inlined_call_operand.vmem [shape: f32[1,256], index: 5, kind: input, shape index: {}]   ;;  %s2628_s6 = inlined_call_operand.vmem [shape: f32[64,5], index: 6, kind: input, shape index: {}]   ;;  %s2629_s7 = inlined_call_operand.vmem [shape: f32[1,5], index: 7, kind: input, shape index: {}]   ;;  %s2630_s8 = inlined_call_operand.hbm [shape: f32[8,5], index: 8, kind: output, shape index: {}]  }
   0x1   :  { %14 = vsyncpa [#allocation6], 0 }
   0x2   :  { %15 = vsyncpa [#allocation4], 0  ;;  %s22_s29 = sshll.u32 %s2623_s1, 4  ;;  %s1967_s30 = smov [#allocation2]   ;;  %s23_s29 = int_to_ptr.hbm [resolvable:$true] %s22_s29 }
   0x3   :  { %s24_s9 = sshll.u32 %s1967_s30, 4  ;;  %s39_s12 = sshll.u32 %s2626_s4, 4  ;;  %s25_s9 = int_to_ptr.vmem [resolvable:$true] %s24_s9  ;;  %s40_s12 = int_to_ptr.hbm [resolvable:$true] %s39_s12 }
   0x4   :  { %s1968_s13 = smov 256   ;;  %s1969_s14 = smov 16  }
   0x5   :  { %30 = dma.hbm_to_vmem [thread:$0]  %s23_s29, 1536, %s25_s9, [#allocation3], %s1968_s13, %s1968_s13, %s1969_s14  }
   0x6   :  { %s1970_s15 = smov [#allocation5]  }
   0x7   :  { %s41_s16 = sshll.u32 %s1970_s15, 4  ;;  %s42_s16 = int_to_ptr.vmem [resolvable:$true] %s41_s16 }
   0x8   :  { %47 = dma.hbm_to_vmem [thread:$0]  %s40_s12, 4096, %s42_s16, [#allocation6], %s1968_s13, %s1968_s13, %s1969_s14  }
   0x9   :  { %1961 = dma.done.wait [#allocation3], 1536  }
   0xa   :  { %1962 = vsyncadd [#allocation3], 4294965760 }
   0xb   :  { %1963 = dma.done.wait [#allocation6], 4096  }
   0xc   :  { %1964 = vsyncadd [#allocation6], 4294963200  ;;  %v93_v0 = vld [vmem:[%s2624_s2 + $0x60] sm:$0xff]  ;;  %v95_v1 = vld [vmem:[%s2624_s2 + $0x70] sm:$0xff]  ;;  %vm184_vm0 = vcmask 1044480   ;;  %vm171_vm1 = vcmask 343040  }
   0xd   :  { %v71_v2 = vld [vmem:[#allocation2 + $0x40] sm:$0xff]  ;;  %v2031_v3 = vpack.c.bf16 %v95_v1, %v93_v0  ;;  %v73_v4 = vld [vmem:[#allocation2 + $0x50] sm:$0x3]  ;;  %v94_v11 = vld [vmem:[%s2624_s2 + $0x68] sm:$0xff]  ;;  %v1971_v47 = vmov 0   ;;  %vm255_vm10 = vcmask 523264  }
   0xe   :  { %v89_v5 = vld [vmem:[%s2624_s2 + $0x40] sm:$0xff]  ;;  %v91_v6 = vld [vmem:[%s2624_s2 + $0x50] sm:$0xff]  ;;  %v79_v7 = vpack.c.bf16 %v73_v4, %v71_v2  ;;  %v96_v12 = vld [vmem:[%s2624_s2 + $0x78] sm:$0xff]  ;;  %s1613_s11 = sshll.u32 %s2630_s8, 4  ;;  %s1614_s11 = int_to_ptr.hbm [resolvable:$true] %s1613_s11 }
   0xf   :  { %v67_v8 = vld [vmem:[#allocation2 + $0x20] sm:$0xff]  ;;  %v69_v9 = vld [vmem:[#allocation2 + $0x30] sm:$0xff]  ;;  %263 = vmatpush.bf16.msra.mxu2 %v2031_v3  ;;  %v2040_v10 = vpack.c.bf16 %v91_v6, %v89_v5  ;;  %v2055_v16 = vpack.c.bf16 %v96_v12, %v94_v11  ;;  %v90_v21 = vld [vmem:[%s2624_s2 + $0x48] sm:$0xff] }
  0x10   :  { %v186_v13 = vsel %vm184_vm0, %v79_v7, 0  ;;  %v85_v14 = vld [vmem:[%s2624_s2 + $0x20] sm:$0xff]  ;;  %v87_v15 = vld [vmem:[%s2624_s2 + $0x30] sm:$0xff]  ;;  %v77_v17 = vpack.c.bf16 %v69_v9, %v67_v8  ;;  %v92_v22 = vld [vmem:[%s2624_s2 + $0x58] sm:$0xff] }
  0x11   :  { %196 = vmatpush.bf16.msra.mxu0 %v186_v13  ;;  %v63_v18 = vld [vmem:[#allocation2] sm:$0xff]  ;;  %v65_v19 = vld [vmem:[#allocation2 + $0x10] sm:$0xff]  ;;  %276 = vmatpush.bf16.msra.mxu3 %v2055_v16  ;;  %v72_v23 = vld [vmem:[#allocation2 + $0x48] sm:$0xff]  ;;  %v2068_v24 = vpack.c.bf16 %v87_v15, %v85_v14  ;;  %v2070_v25 = vpack.c.bf16 %v92_v22, %v90_v21 }
  0x12   :  { %v81_v20 = vld [vmem:[%s2624_s2] sm:$0xff]  ;;  %v74_v26 = vld [vmem:[#allocation2 + $0x58] sm:$0x3]  ;;  %v86_v27 = vld [vmem:[%s2624_s2 + $0x28] sm:$0xff]  ;;  %v75_v33 = vpack.c.bf16 %v65_v19, %v63_v18 }
  0x13   :  { %264 = vmatpush.bf16.msra.mxu2 %v2040_v10  ;;  %v88_v28 = vld [vmem:[%s2624_s2 + $0x38] sm:$0xff]  ;;  %v83_v29 = vld [vmem:[%s2624_s2 + $0x10] sm:$0xff]  ;;  %v80_v30 = vpack.c.bf16 %v74_v26, %v72_v23  ;;  %v68_v31 = vld [vmem:[#allocation2 + $0x28] sm:$0xff] }
  0x14   :  { %v70_v32 = vld [vmem:[#allocation2 + $0x38] sm:$0xff]  ;;  %v153_v34 = vld [vmem:[%s2622_s0] sm:$0xff]  ;;  %v154_v35 = vld [vmem:[%s2622_s0 + $0x8] sm:$0xff]  ;;  %v2089_v37 = vpack.c.bf16 %v88_v28, %v86_v27  ;;  %v2092_v38 = vpack.c.bf16 %v83_v29, %v81_v20 }
  0x15   :  { %197 = vmatpush.bf16.msra.mxu0 %v77_v17  ;;  %277 = vmatpush.bf16.msra.mxu3 %v2070_v25  ;;  %v189_v36 = vsel %vm184_vm0, %v80_v30, 0  ;;  %v78_v39 = vpack.c.bf16 %v70_v32, %v68_v31  ;;  %v82_v40 = vld [vmem:[%s2624_s2 + $0x8] sm:$0xff]  ;;  %v84_v41 = vld [vmem:[%s2624_s2 + $0x18] sm:$0xff]  ;;  %v161_v42 = vpack.c.bf16 %v154_v35, %v153_v34  ;;  %v165_v48 = vld [vmem:[%s2625_s3] sm:$0x3]  ;;  %s1972_s3 = smov 64  }
  0x16   :  { %225 = vmatpush.bf16.msra.mxu1 %v189_v36  ;;  %v64_v43 = vld [vmem:[#allocation2 + $0x8] sm:$0xff]  ;;  %v66_v44 = vld [vmem:[#allocation2 + $0x18] sm:$0xff]  ;;  %v2101_v45 = vpack.c.bf16 %v84_v41, %v82_v40  ;;  %v2110_v49 = vperm.slane %v165_v48, 0  ;;  %v2113_v60 = vperm.slane %v165_v48, 1  ;;  %v133_v18 = vld [vmem:[#allocation5 + $0xe0] sm:$0xff] }
  0x17   :  { %265 = vmatpush.bf16.msra.mxu2 %v2068_v24  ;;  %v76_v46 = vpack.c.bf16 %v66_v44, %v64_v43  ;;  %v135_v19 = vld [vmem:[#allocation5 + $0xf0] sm:$0xff]  ;;  %v134_v20 = vld [vmem:[#allocation5 + $0xe8] sm:$0xff]  ;;  %v136_v22 = vld [vmem:[#allocation5 + $0xf8] sm:$0xff] }
  0x18   :  { %v2120_v21 = vpack.c.bf16 %v135_v19, %v133_v18  ;;  %v129_v23 = vld [vmem:[#allocation5 + $0xc0] sm:$0xff]  ;;  %v131_v26 = vld [vmem:[#allocation5 + $0xd0] sm:$0xff]  ;;  %v2122_v27 = vpack.c.bf16 %v136_v22, %v134_v20  ;;  %v130_v28 = vld [vmem:[#allocation5 + $0xc8] sm:$0xff] }
  0x19   :  { %198 = vmatpush.bf16.msra.mxu0 %v75_v33  ;;  %278 = vmatpush.bf16.msra.mxu3 %v2089_v37  ;;  %v132_v29 = vld [vmem:[#allocation5 + $0xd8] sm:$0xff]  ;;  %v2125_v30 = vpack.c.bf16 %v131_v26, %v129_v23  ;;  %v125_v32 = vld [vmem:[#allocation5 + $0xa0] sm:$0xff]  ;;  %v127_v33 = vld [vmem:[#allocation5 + $0xb0] sm:$0xff] }
  0x1a   :  { %226 = vmatpush.bf16.msra.mxu1 %v78_v39  ;;  %v2129_v31 = vpack.c.bf16 %v132_v29, %v130_v28  ;;  %v126_v35 = vld [vmem:[#allocation5 + $0xa8] sm:$0xff]  ;;  %v128_v36 = vld [vmem:[#allocation5 + $0xb8] sm:$0xff]  ;;  %v2135_v39 = vpack.c.bf16 %v127_v33, %v125_v32  ;;  %v123_v43 = vld [vmem:[#allocation5 + $0x90] sm:$0xff] }
  0x1b   :  { %266 = vmatpush.bf16.msra.mxu2 %v2092_v38  ;;  %v2141_v41 = vpack.c.bf16 %v128_v36, %v126_v35  ;;  %v122_v44 = vld [vmem:[#allocation5 + $0x88] sm:$0xff]  ;;  %v105_v19 = vld [vmem:[#allocation5] sm:$0xff]  ;;  %v107_v20 = vld [vmem:[#allocation5 + $0x10] sm:$0xff] }
  0x1c   :  { %1624 = vmatmul.msk.bf16.vlgmr.msra.gmra.mxu0 %vm171_vm1, %v161_v42  ;;  %v106_v22 = vld [vmem:[#allocation5 + $0x8] sm:$0xff]  ;;  %v108_v23 = vld [vmem:[#allocation5 + $0x18] sm:$0xff]  ;;  %v2195_v29 = vpack.c.bf16 %v107_v20, %v105_v19  ;;  %vm1634_vm11 = vmpackc.low %vm255_vm10, %vm255_vm10 }
  0x1d   :  { %279 = vmatpush.bf16.msra.mxu3 %v2101_v45  ;;  %504 = vmatpush.bf16.msrb.mxu0 %v2120_v21  ;;  %v2199_v33 = vpack.c.bf16 %v108_v23, %v106_v22 }
  0x1e   :  { %267 = vmatmul.bf16.vlgmr.msra.gmra.mxu2 %v1971_v47  ;;  %227 = vmatpush.bf16.msra.mxu1 %v76_v46  ;;  %v124_v46 = vld [vmem:[#allocation5 + $0x98] sm:$0xff] }
  0x1f   :  { %341 = vmatpush.bf16.msrb.mxu2 %v2120_v21 }
  0x20   :  { %280 = vmatmul.bf16.vlgmr.msra.gmra.mxu3 %v1971_v47 }
  0x21   :  { %1628 = vmatmul.msk.bf16.vlgmr.msra.gmra.mxu1 %vm171_vm1, %v161_v42  ;;  %354 = vmatpush.bf16.msrb.mxu3 %v2122_v27  ;;  %v121_v42 = vld [vmem:[#allocation5 + $0x80] sm:$0xff] }
  0x22   :  { %517 = vmatpush.bf16.msrb.mxu1 %v2122_v27  ;;  %505 = vmatpush.bf16.msrb.mxu0 %v2125_v30  ;;  %v2145_v47 = vpack.c.bf16 %v123_v43, %v121_v42  ;;  %v249_v42 = vld [vmem:[%s2627_s5] sm:$0x3] }
  0x23   :  { %342 = vmatpush.bf16.msrb.mxu2 %v2125_v30  ;;  %v2255_v43 = vperm.slane %v249_v42, 0 }
  0x25   :  { %355 = vmatpush.bf16.msrb.mxu3 %v2129_v31 }
  0x26   :  { %518 = vmatpush.bf16.msrb.mxu1 %v2129_v31  ;;  %506 = vmatpush.bf16.msrb.mxu0 %v2135_v39 }
  0x27   :  { %343 = vmatpush.bf16.msrb.mxu2 %v2135_v39 }
  0x29   :  { %356 = vmatpush.bf16.msrb.mxu3 %v2141_v41 }
  0x2a   :  { %519 = vmatpush.bf16.msrb.mxu1 %v2141_v41  ;;  %507 = vmatpush.bf16.msrb.mxu0 %v2145_v47 }
  0x2b   :  { %344 = vmatpush.bf16.msrb.mxu2 %v2145_v47 }
  0x99   :  { %v200_v50 = vpop.f32.mrf.mxu0 }
  0x9a   :  { %v201_v51 = vadd.f32 %v200_v50, %v2110_v49  ;;  %v2149_v50 = vpack.c.bf16 %v124_v46, %v122_v44 }
  0x9c   :  { %357 = vmatpush.bf16.msrb.mxu3 %v2149_v50  ;;  %520 = vmatpush.bf16.msrb.mxu1 %v2149_v50 }
  0x9e   :  { %v229_v61 = vpop.f32.mrf.mxu1 }
  0x9f   :  { %v230_v62 = vadd.f32 %v229_v61, %v2113_v60 }
  0xa1   :  { %v268_v52 = vpop.f32.mrf.mxu2 }
  0xa2   :  { %v285_v53 = vadd.f32 %v268_v52, %v201_v51  ;;  %v117_v51 = vld [vmem:[#allocation5 + $0x60] sm:$0xff]  ;;  %v119_v52 = vld [vmem:[#allocation5 + $0x70] sm:$0xff] }
  0xa3   :  { %v281_v55 = vpop.f32.mrf.mxu3 }
  0xa4   :  { %v1632_v54 = vmul.f32 -1.442695, %v285_v53  ;;  %v286_v0 = vadd.f32 %v281_v55, %v230_v62  ;;  %v118_v53 = vld [vmem:[#allocation5 + $0x68] sm:$0xff]  ;;  %v2153_v55 = vpack.c.bf16 %v119_v52, %v117_v51 }
  0xa5   :  { %v114_v62 = vld [vmem:[#allocation5 + $0x48] sm:$0xff] }
  0xa6   :  { %1693 = vpow2.f32 %v1632_v54  ;;  %v1633_v14 = vmul.f32 -1.442695, %v286_v0  ;;  %v120_v54 = vld [vmem:[#allocation5 + $0x78] sm:$0xff]  ;;  %345 = vmatpush.bf16.msrb.mxu2 %v2153_v55  ;;  %508 = vmatpush.bf16.msrb.mxu0 %v2153_v55 }
  0xa9   :  { %v270_v56 = vpop.f32.mrf.mxu2 }
  0xab   :  { %v283_v58 = vpop.f32.mrf.mxu3 }
  0xac   :  { %v1694_v57 = vpop.eup %1693  ;;  %v113_v58 = vld [vmem:[#allocation5 + $0x40] sm:$0xff] }
  0xad   :  { %v290_v59 = vadd.f32 1.0, %v1694_v57  ;;  %v2158_v57 = vpack.c.bf16 %v120_v54, %v118_v53 }
  0xaf   :  { %1695 = vrcp.f32 %v290_v59  ;;  %v302_v4 = vand.u32 2147483648, %v290_v59  ;;  %v300_v6 = vand.u32 2147483647, %v290_v59  ;;  %vm296_vm3 = vweird.f32 %v290_v59  ;;  %358 = vmatpush.bf16.msrb.mxu3 %v2158_v57  ;;  %521 = vmatpush.bf16.msrb.mxu1 %v2158_v57 }
  0xb0   :  { %1697 = vtanh.f32 %v286_v0 }
  0xb1   :  { %v303_v9 = vor.u32 1.1754944e-38, %v302_v4  ;;  %vm301_vm5 = vcmp.eq.f32.partialorder %v300_v6, 8.507059e+37  ;;  %1699 = vpow2.f32 %v1633_v14 }
  0xb5   :  { %v1696_v63 = vpop.eup %1695 }
  0xb6   :  { %v292_v1 = vmul.f32 %v1696_v63, %v290_v59  ;;  %vm297_vm2 = vweird.f32 %v1696_v63  ;;  %v1698_v8 = vpop.eup %1697  ;;  %v115_v59 = vld [vmem:[#allocation5 + $0x50] sm:$0xff] }
  0xb7   :  { %vm298_vm4 = vmor %vm296_vm3, %vm297_vm2  ;;  %v1700_v15 = vpop.eup %1699  ;;  %v2167_v4 = vpack.c.bf16 %v115_v59, %v113_v58 }
  0xb8   :  { %v293_v2 = vsub.f32 1.0, %v292_v1  ;;  %v2117_v17 = vadd.f32 1.0, %v1700_v15 }
  0xb9   :  { %346 = vmatpush.bf16.msrb.mxu2 %v2167_v4  ;;  %509 = vmatpush.bf16.msrb.mxu0 %v2167_v4 }
  0xba   :  { %v294_v5 = vmul.f32 %v1696_v63, %v293_v2  ;;  %1701 = vrcp.f32 %v2117_v17  ;;  %vm316_vm6 = vweird.f32 %v2117_v17  ;;  %v322_v2 = vand.u32 2147483648, %v2117_v17 }
  0xbb   :  { %v320_v6 = vand.u32 2147483647, %v2117_v17 }
  0xbc   :  { %v295_v7 = vadd.f32 %v1696_v63, %v294_v5  ;;  %v323_v14 = vor.u32 1.1754944e-38, %v322_v2 }
  0xbd   :  { %vm321_vm9 = vcmp.eq.f32.partialorder %v320_v6, 8.507059e+37 }
  0xbe   :  { %v299_v11 = vsel %vm298_vm4, %v1696_v63, %v295_v7  ;;  %v116_v63 = vld [vmem:[#allocation5 + $0x58] sm:$0xff] }
  0xbf   :  { %v304_v12 = vsel %vm301_vm5, %v303_v9, %v299_v11  ;;  %v2173_v7 = vpack.c.bf16 %v116_v63, %v114_v62  ;;  %v111_v9 = vld [vmem:[#allocation5 + $0x30] sm:$0xff] }
  0xc0   :  { %v327_v13 = vmul.f32 %v1698_v8, %v304_v12  ;;  %v2132_v34 = vpop.eup %1701  ;;  %v326_v61 = vmul.f32 0.0, %v304_v12  ;;  %v109_v8 = vld [vmem:[#allocation5 + $0x20] sm:$0xff]  ;;  %v110_v12 = vld [vmem:[#allocation5 + $0x28] sm:$0xff] }
  0xc1   :  { %v312_v40 = vmul.f32 %v2132_v34, %v2117_v17  ;;  %vm317_vm7 = vweird.f32 %v2132_v34  ;;  %v2184_v15 = vpack.c.bf16 %v111_v9, %v109_v8  ;;  %359 = vmatpush.bf16.msrb.mxu3 %v2173_v7  ;;  %522 = vmatpush.bf16.msrb.mxu1 %v2173_v7 }
  0xc2   :  { %329 = vrot.lane.b32.xlu0 %v327_v13, %s1972_s3  ;;  %vm2179_vm8 = vmor %vm316_vm6, %vm317_vm7  ;;  %v112_v13 = vld [vmem:[#allocation5 + $0x38] sm:$0xff] }
  0xc3   :  { %v313_v48 = vsub.f32 1.0, %v312_v40  ;;  %v2191_v17 = vpack.c.bf16 %v112_v13, %v110_v12  ;;  %347 = vmatpush.bf16.msrb.mxu2 %v2184_v15  ;;  %510 = vmatpush.bf16.msrb.mxu0 %v2184_v15 }
  0xc5   :  { %v314_v56 = vmul.f32 %v2132_v34, %v313_v48  ;;  %360 = vmatpush.bf16.msrb.mxu3 %v2191_v17  ;;  %523 = vmatpush.bf16.msrb.mxu1 %v2191_v17 }
  0xc7   :  { %v315_v5 = vadd.f32 %v2132_v34, %v314_v56  ;;  %348 = vmatpush.bf16.msrb.mxu2 %v2195_v29  ;;  %511 = vmatpush.bf16.msrb.mxu0 %v2195_v29  ;;  %v202_v56 = vpop.f32.mrf.mxu0 }
  0xc8   :  { %v203_v59 = vadd.f32 %v202_v56, %v2110_v49 }
  0xc9   :  { %v319_v18 = vsel %vm2179_vm8, %v2132_v34, %v315_v5  ;;  %361 = vmatpush.bf16.msrb.mxu3 %v2199_v33  ;;  %524 = vmatpush.bf16.msrb.mxu1 %v2199_v33 }
  0xca   :  { %v324_v28 = vsel %vm321_vm9, %v323_v14, %v319_v18 }
  0xcb   :  { %426 = vmatpush.bf16.msra.mxu2 %v2031_v3  ;;  %667 = vmatpush.bf16.msra.mxu0 %v2120_v21 }
  0xcd   :  { %439 = vmatpush.bf16.msra.mxu3 %v2055_v16  ;;  %589 = vmatpush.bf16.msra.mxu1 %v2031_v3 }
  0xcf   :  { %427 = vmatpush.bf16.msra.mxu2 %v2040_v10  ;;  %668 = vmatpush.bf16.msra.mxu0 %v2125_v30 }
  0xd1   :  { %440 = vmatpush.bf16.msra.mxu3 %v2070_v25  ;;  %590 = vmatpush.bf16.msra.mxu1 %v2040_v10 }
  0xd3   :  { %428 = vmatpush.bf16.msra.mxu2 %v2068_v24  ;;  %669 = vmatpush.bf16.msra.mxu0 %v2135_v39 }
  0xd5   :  { %441 = vmatpush.bf16.msra.mxu3 %v2089_v37  ;;  %591 = vmatpush.bf16.msra.mxu1 %v2068_v24 }
  0xd7   :  { %429 = vmatpush.bf16.msra.mxu2 %v2092_v38  ;;  %670 = vmatpush.bf16.msra.mxu0 %v2145_v47 }
  0xd9   :  { %442 = vmatpush.bf16.msra.mxu3 %v2101_v45  ;;  %592 = vmatpush.bf16.msra.mxu1 %v2092_v38 }
  0xdb   :  { %671 = vmatpush.bf16.msra.mxu0 %v2153_v55 }
  0xdf   :  { %672 = vmatpush.bf16.msra.mxu0 %v2167_v4 }
  0xe3   :  { %673 = vmatpush.bf16.msra.mxu0 %v2184_v15 }
  0xe7   :  { %674 = vmatpush.bf16.msra.mxu0 %v2195_v29 }
 0x134   :  { %v330_v0 = vpop.permute.xlu0 %329 }
 0x135   :  { %v2163_v1 = vadd.f32 %v330_v0, %v326_v61  ;;  %v2259_v61 = vperm.slane %v249_v42, 1 }
 0x137   :  { %1703 = vtanh.f32 %v2163_v1 }
 0x13d   :  { %v1704_v26 = vpop.eup %1703 }
 0x13e   :  { %v334_v32 = vmul.f32 %v1704_v26, %v324_v28 }
 0x140   :  { %336 = vrot.lane.b32.xlu0 %v334_v32, %s1972_s3  ;;  %v415_v34 = vpack.c.bf16 %v334_v32, %v334_v32 }
 0x142   :  { %417 = vrot.lane.b32.xlu1 %v415_v34, %s1972_s3  ;;  %v231_v34 = vpop.f32.mrf.mxu1 }
 0x1b2   :  { %v337_v35 = vpop.permute.xlu0 %336 }
 0x1b3   :  { %v1635_v36 = vpack.c.bf16 %v337_v35, %v337_v35 }
 0x1b4   :  { %v418_v40 = vpop.permute.xlu1 %417 }
 0x1b5   :  { %1636 = vmatmul.msk.bf16.vlgmr.msrb.gmra.mxu2 %vm1634_vm11, %v1635_v36  ;;  %1639 = vmatmul.msk.bf16.vlgmr.msrb.gmra.mxu3 %vm1634_vm11, %v1635_v36  ;;  %v232_v36 = vadd.f32 %v231_v34, %v2113_v60 }
 0x1b6   :  { %602 = vmatpush.bf16.msrb.mxu3 %v2055_v16  ;;  %752 = vmatpush.bf16.msrb.mxu2 %v2031_v3 }
 0x1ba   :  { %603 = vmatpush.bf16.msrb.mxu3 %v2070_v25  ;;  %753 = vmatpush.bf16.msrb.mxu2 %v2040_v10 }
 0x1be   :  { %604 = vmatpush.bf16.msrb.mxu3 %v2089_v37  ;;  %754 = vmatpush.bf16.msrb.mxu2 %v2068_v24 }
 0x1c2   :  { %605 = vmatpush.bf16.msrb.mxu3 %v2101_v45  ;;  %755 = vmatpush.bf16.msrb.mxu2 %v2092_v38 }
 0x1c5   :  { %1642 = vmatmul.msk.bf16.vlgmr.msra.gmra.mxu2 %vm255_vm10, %v418_v40  ;;  %1643 = vmatmul.msk.bf16.vlgmr.msra.gmra.mxu3 %vm255_vm10, %v418_v40 }
 0x1c6   :  { %765 = vmatpush.bf16.msra.mxu3 %v2055_v16  ;;  %830 = vmatpush.bf16.msra.mxu2 %v2120_v21 }
 0x1ca   :  { %766 = vmatpush.bf16.msra.mxu3 %v2070_v25  ;;  %831 = vmatpush.bf16.msra.mxu2 %v2125_v30 }
 0x1ce   :  { %767 = vmatpush.bf16.msra.mxu3 %v2089_v37  ;;  %832 = vmatpush.bf16.msra.mxu2 %v2135_v39 }
 0x1d2   :  { %768 = vmatpush.bf16.msra.mxu3 %v2101_v45  ;;  %833 = vmatpush.bf16.msra.mxu2 %v2145_v47 }
 0x1d6   :  { %834 = vmatpush.bf16.msra.mxu2 %v2153_v55 }
 0x1da   :  { %835 = vmatpush.bf16.msra.mxu2 %v2167_v4 }
 0x1de   :  { %836 = vmatpush.bf16.msra.mxu2 %v2184_v15 }
 0x1e2   :  { %837 = vmatpush.bf16.msra.mxu2 %v2195_v29 }
 0x238   :  { %v350_v44 = vpop.f32.mrf.mxu2  ;;  %v363_v46 = vpop.f32.mrf.mxu3 }
 0x239   :  { %v351_v48 = vadd.f32 %v350_v44, %v2255_v43  ;;  %v2262_v6 = vadd.f32 %v363_v46, %v2259_v61 }
 0x23b   :  { %v1640_v51 = vmul.f32 -1.442695, %v351_v48 }
 0x23d   :  { %1705 = vpow2.f32 %v1640_v51 }
 0x240   :  { %v352_v52 = vpop.f32.mrf.mxu2  ;;  %v365_v53 = vpop.f32.mrf.mxu3 }
 0x243   :  { %v1706_v54 = vpop.eup %1705 }
 0x244   :  { %v370_v58 = vadd.f32 1.0, %v1706_v54 }
 0x246   :  { %1707 = vrcp.f32 %v370_v58  ;;  %v382_v13 = vand.u32 2147483648, %v370_v58  ;;  %v380_v18 = vand.u32 2147483647, %v370_v58  ;;  %vm376_vm13 = vweird.f32 %v370_v58 }
 0x248   :  { %v431_v62 = vpop.f32.mrf.mxu2  ;;  %v444_v63 = vpop.f32.mrf.mxu3  ;;  %v383_v23 = vor.u32 1.1754944e-38, %v382_v13  ;;  %vm381_vm15 = vcmp.eq.f32.partialorder %v380_v18, 8.507059e+37  ;;  %v158_v18 = vld [vmem:[%s2622_s0 + $0x28] sm:$0xff] }
 0x249   :  { %v448_v0 = vadd.f32 %v431_v62, %v203_v59  ;;  %v449_v42 = vadd.f32 %v444_v63, %v232_v36 }
 0x24b   :  { %v1644_v2 = vmul.f32 -1.442695, %v448_v0  ;;  %v1645_v0 = vmul.f32 -1.442695, %v449_v42 }
 0x24c   :  { %v1708_v5 = vpop.eup %1707 }
 0x24d   :  { %1709 = vpow2.f32 %v1644_v2  ;;  %v372_v8 = vmul.f32 %v1708_v5, %v370_v58  ;;  %vm377_vm12 = vweird.f32 %v1708_v5 }
 0x24e   :  { %1711 = vtanh.f32 %v2262_v6  ;;  %vm378_vm14 = vmor %vm376_vm13, %vm377_vm12 }
 0x24f   :  { %v373_v9 = vsub.f32 1.0, %v372_v8  ;;  %v156_v8 = vld [vmem:[%s2622_s0 + $0x18] sm:$0xff] }
 0x250   :  { %v433_v11 = vpop.f32.mrf.mxu2  ;;  %v446_v12 = vpop.f32.mrf.mxu3 }
 0x251   :  { %v374_v14 = vmul.f32 %v1708_v5, %v373_v9 }
 0x253   :  { %v1710_v19 = vpop.eup %1709  ;;  %v375_v20 = vadd.f32 %v1708_v5, %v374_v14  ;;  %v157_v14 = vld [vmem:[%s2622_s0 + $0x20] sm:$0xff] }
 0x254   :  { %v453_v22 = vadd.f32 1.0, %v1710_v19  ;;  %v1712_v28 = vpop.eup %1711  ;;  %v163_v19 = vpack.c.bf16 %v158_v18, %v157_v14 }
 0x255   :  { %v379_v26 = vsel %vm378_vm14, %v1708_v5, %v375_v20  ;;  %v155_v5 = vld [vmem:[%s2622_s0 + $0x10] sm:$0xff] }
 0x256   :  { %1713 = vrcp.f32 %v453_v22  ;;  %v2265_v32 = vsel %vm381_vm15, %v383_v23, %v379_v26  ;;  %v465_v48 = vand.u32 2147483648, %v453_v22  ;;  %v463_v52 = vand.u32 2147483647, %v453_v22 }
 0x257   :  { %v407_v35 = vmul.f32 %v1712_v28, %v2265_v32  ;;  %1715 = vtanh.f32 %v449_v42  ;;  %vm459_vm2 = vweird.f32 %v453_v22  ;;  %v162_v9 = vpack.c.bf16 %v156_v8, %v155_v5 }
 0x258   :  { %v466_v54 = vor.u32 1.1754944e-38, %v465_v48  ;;  %vm464_vm4 = vcmp.eq.f32.partialorder %v463_v52, 8.507059e+37  ;;  %1717 = vpow2.f32 %v1645_v0  ;;  %v160_v48 = vld [vmem:[%s2622_s0 + $0x38] sm:$0xff] }
 0x259   :  { %409 = vrot.lane.b32.xlu2 %v407_v35, %s1972_s3  ;;  %1629 = vmatmul.msk.bf16.gmra.mxu1 %vm171_vm1, %v162_v9 }
 0x25a   :  { %1625 = vmatmul.msk.bf16.gmra.mxu0 %vm171_vm1, %v162_v9 }
 0x25c   :  { %v1714_v40 = vpop.eup %1713 }
 0x25d   :  { %v455_v44 = vmul.f32 %v1714_v40, %v453_v22  ;;  %vm460_vm0 = vweird.f32 %v1714_v40  ;;  %v1716_v58 = vpop.eup %1715 }
 0x25e   :  { %vm461_vm3 = vmor %vm459_vm2, %vm460_vm0  ;;  %v1718_v63 = vpop.eup %1717 }
 0x25f   :  { %v456_v46 = vsub.f32 1.0, %v455_v44  ;;  %v473_v2 = vadd.f32 1.0, %v1718_v63  ;;  %v406_v63 = vmul.f32 0.0, %v2265_v32 }
 0x261   :  { %v457_v51 = vmul.f32 %v1714_v40, %v456_v46  ;;  %1719 = vrcp.f32 %v473_v2  ;;  %v485_v34 = vand.u32 2147483648, %v473_v2  ;;  %vm479_vm6 = vweird.f32 %v473_v2  ;;  %v159_v46 = vld [vmem:[%s2622_s0 + $0x30] sm:$0xff] }
 0x262   :  { %v483_v35 = vand.u32 2147483647, %v473_v2  ;;  %v164_v52 = vpack.c.bf16 %v160_v48, %v159_v46 }
 0x263   :  { %v458_v53 = vadd.f32 %v1714_v40, %v457_v51 }
 0x264   :  { %vm484_vm8 = vcmp.eq.f32.partialorder %v483_v35, 8.507059e+37 }
 0x265   :  { %v462_v56 = vsel %vm461_vm3, %v1714_v40, %v458_v53  ;;  %v486_v40 = vor.u32 1.1754944e-38, %v485_v34  ;;  %v1641_v53 = vmul.f32 -1.442695, %v2262_v6 }
 0x266   :  { %v467_v59 = vsel %vm464_vm4, %v466_v54, %v462_v56 }
 0x267   :  { %v490_v62 = vmul.f32 %v1716_v58, %v467_v59  ;;  %v1720_v11 = vpop.eup %1719  ;;  %v489_v22 = vmul.f32 %v467_v59, %v2163_v1 }
 0x268   :  { %v475_v12 = vmul.f32 %v1720_v11, %v473_v2  ;;  %vm480_vm5 = vweird.f32 %v1720_v11 }
 0x269   :  { %492 = vrot.lane.b32.xlu1 %v490_v62, %s1972_s3  ;;  %1630 = vmatmul.msk.bf16.gmra.mxu1 %vm171_vm1, %v163_v19  ;;  %vm481_vm7 = vmor %vm479_vm6, %vm480_vm5 }
 0x26a   :  { %v476_v13 = vsub.f32 1.0, %v475_v12  ;;  %1626 = vmatmul.msk.bf16.gmra.mxu0 %vm171_vm1, %v163_v19 }
 0x26c   :  { %v477_v20 = vmul.f32 %v1720_v11, %v476_v13 }
 0x26e   :  { %v478_v28 = vadd.f32 %v1720_v11, %v477_v20 }
 0x270   :  { %v482_v36 = vsel %vm481_vm7, %v1720_v11, %v478_v28 }
 0x271   :  { %v487_v1 = vsel %vm484_vm8, %v486_v40, %v482_v36 }
 0x279   :  { %1631 = vmatmul.msk.bf16.gmra.mxu1 %vm171_vm1, %v164_v52 }
 0x27a   :  { %1627 = vmatmul.msk.bf16.gmra.mxu0 %vm171_vm1, %v164_v52 }
 0x2b3   :  { %v410_v0 = vpop.permute.xlu2 %409 }
 0x2b4   :  { %v2303_v2 = vadd.f32 %v410_v0, %v406_v63 }
 0x2d7   :  { %v205_v28 = vpop.f32.mrf.mxu0 }
 0x2db   :  { %v493_v23 = vpop.permute.xlu1 %492 }
 0x2dc   :  { %v2286_v26 = vadd.f32 %v493_v23, %v489_v22  ;;  %v234_v23 = vpop.f32.mrf.mxu1 }
 0x2de   :  { %1721 = vtanh.f32 %v2286_v26 }
 0x2df   :  { %1723 = vpow2.f32 %v1641_v53  ;;  %v2335_v35 = vpop.f32.mrf.mxu0 }
 0x2e4   :  { %v1722_v42 = vpop.eup %1721  ;;  %v2333_v34 = vpop.f32.mrf.mxu1 }
 0x2e5   :  { %v497_v44 = vmul.f32 %v1722_v42, %v487_v1  ;;  %v1724_v54 = vpop.eup %1723 }
 0x2e6   :  { %v390_v56 = vadd.f32 1.0, %v1724_v54 }
 0x2e7   :  { %499 = vrot.lane.b32.xlu2 %v497_v44, %s1972_s3  ;;  %v578_v51 = vpack.c.bf16 %v497_v44, %v497_v44  ;;  %v2339_v40 = vpop.f32.mrf.mxu0 }
 0x2e8   :  { %1725 = vrcp.f32 %v390_v56  ;;  %v402_v9 = vand.u32 2147483648, %v390_v56  ;;  %vm396_vm1 = vweird.f32 %v390_v56  ;;  %v400_v6 = vand.u32 2147483647, %v390_v56 }
 0x2e9   :  { %580 = vrot.lane.b32.xlu0 %v578_v51, %s1972_s3  ;;  %1727 = vtanh.f32 %v2303_v2 }
 0x2ea   :  { %v403_v13 = vor.u32 1.1754944e-38, %v402_v9  ;;  %vm401_vm12 = vcmp.eq.f32.partialorder %v400_v6, 8.507059e+37 }
 0x2ec   :  { %v2337_v36 = vpop.f32.mrf.mxu1 }
 0x2ee   :  { %v1726_v58 = vpop.eup %1725 }
 0x2ef   :  { %v392_v59 = vmul.f32 %v1726_v58, %v390_v56  ;;  %vm397_vm9 = vweird.f32 %v1726_v58  ;;  %v1728_v12 = vpop.eup %1727  ;;  %v2343_v1 = vpop.f32.mrf.mxu0 }
 0x2f0   :  { %vm398_vm11 = vmor %vm396_vm1, %vm397_vm9 }
 0x2f1   :  { %v393_v62 = vsub.f32 1.0, %v392_v59 }
 0x2f3   :  { %v394_v5 = vmul.f32 %v1726_v58, %v393_v62 }
 0x2f4   :  { %v2341_v42 = vpop.f32.mrf.mxu1 }
 0x2f5   :  { %v395_v8 = vadd.f32 %v1726_v58, %v394_v5  ;;  %v206_v5 = vadd.f32 %v205_v28, %v2110_v49 }
 0x2f7   :  { %v399_v11 = vsel %vm398_vm11, %v1726_v58, %v395_v8  ;;  %v2347_v46 = vpop.f32.mrf.mxu0 }
 0x2f8   :  { %v404_v14 = vsel %vm401_vm12, %v403_v13, %v399_v11 }
 0x2f9   :  { %v414_v18 = vmul.f32 %v1728_v12, %v404_v14 }
 0x2fc   :  { %v2345_v44 = vpop.f32.mrf.mxu1 }
 0x2ff   :  { %v2351_v51 = vpop.f32.mrf.mxu0 }
 0x304   :  { %v2349_v48 = vpop.f32.mrf.mxu1 }
 0x341   :  { %v500_v19 = vpop.permute.xlu2 %499 }
 0x342   :  { %v502_v32 = vsel %vm255_vm10, %v500_v19, %v414_v18 }
 0x343   :  { %v503_v20 = vpack.c.bf16 %v502_v32, %v502_v32 }
 0x345   :  { %512 = vmatmul.bf16.vlgmr.msrb.gmra.mxu0 %v503_v20  ;;  %525 = vmatmul.bf16.vlgmr.msrb.gmra.mxu1 %v503_v20 }
 0x346   :  { %680 = vmatpush.bf16.msrb.mxu1 %v2122_v27  ;;  %915 = vmatpush.bf16.msrb.mxu0 %v2031_v3 }
 0x34a   :  { %681 = vmatpush.bf16.msrb.mxu1 %v2129_v31  ;;  %916 = vmatpush.bf16.msrb.mxu0 %v2040_v10 }
 0x34e   :  { %682 = vmatpush.bf16.msrb.mxu1 %v2141_v41  ;;  %917 = vmatpush.bf16.msrb.mxu0 %v2068_v24 }
 0x352   :  { %683 = vmatpush.bf16.msrb.mxu1 %v2149_v50  ;;  %918 = vmatpush.bf16.msrb.mxu0 %v2092_v38 }
 0x356   :  { %684 = vmatpush.bf16.msrb.mxu1 %v2158_v57 }
 0x35a   :  { %685 = vmatpush.bf16.msrb.mxu1 %v2173_v7 }
 0x35b   :  { %v581_v22 = vpop.permute.xlu0 %580 }
 0x35c   :  { %1648 = vmatmul.msk.bf16.vlgmr.msra.gmra.mxu1 %vm255_vm10, %v581_v22  ;;  %1649 = vmatmul.msk.bf16.vlgmr.msrb.gmra.mxu3 %vm255_vm10, %v581_v22 }
 0x35d   :  { %843 = vmatpush.bf16.msrb.mxu3 %v2122_v27 }
 0x35e   :  { %686 = vmatpush.bf16.msrb.mxu1 %v2191_v17 }
 0x361   :  { %844 = vmatpush.bf16.msrb.mxu3 %v2129_v31 }
 0x362   :  { %687 = vmatpush.bf16.msrb.mxu1 %v2199_v33 }
 0x365   :  { %845 = vmatpush.bf16.msrb.mxu3 %v2141_v41 }
 0x366   :  { %928 = vmatpush.bf16.msra.mxu1 %v2055_v16 }
 0x369   :  { %846 = vmatpush.bf16.msrb.mxu3 %v2149_v50 }
 0x36a   :  { %929 = vmatpush.bf16.msra.mxu1 %v2070_v25 }
 0x36d   :  { %847 = vmatpush.bf16.msrb.mxu3 %v2158_v57 }
 0x36e   :  { %930 = vmatpush.bf16.msra.mxu1 %v2089_v37 }
 0x371   :  { %848 = vmatpush.bf16.msrb.mxu3 %v2173_v7 }
 0x372   :  { %931 = vmatpush.bf16.msra.mxu1 %v2101_v45 }
 0x375   :  { %849 = vmatpush.bf16.msrb.mxu3 %v2191_v17 }
 0x379   :  { %850 = vmatpush.bf16.msrb.mxu3 %v2199_v33 }
 0x3c2   :  { %v513_v52 = vpop.f32.mrf.mxu0  ;;  %v526_v53 = vpop.f32.mrf.mxu1 }
 0x3c3   :  { %v514_v54 = vadd.f32 %v513_v52, %v2255_v43  ;;  %v2356_v8 = vadd.f32 %v526_v53, %v2259_v61 }
 0x3c5   :  { %v1646_v56 = vmul.f32 -1.442695, %v514_v54 }
 0x3c7   :  { %1729 = vpow2.f32 %v1646_v56 }
 0x3ca   :  { %v515_v58 = vpop.f32.mrf.mxu0  ;;  %v528_v59 = vpop.f32.mrf.mxu1 }
 0x3cd   :  { %v1730_v62 = vpop.eup %1729 }
 0x3ce   :  { %v533_v0 = vadd.f32 1.0, %v1730_v62 }
 0x3d0   :  { %1731 = vrcp.f32 %v533_v0  ;;  %v545_v13 = vand.u32 2147483648, %v533_v0  ;;  %v543_v18 = vand.u32 2147483647, %v533_v0  ;;  %vm539_vm14 = vweird.f32 %v533_v0 }
 0x3d1   :  { %1733 = vtanh.f32 %v2356_v8 }
 0x3d2   :  { %v546_v20 = vor.u32 1.1754944e-38, %v545_v13  ;;  %vm544_vm0 = vcmp.eq.f32.partialorder %v543_v18, 8.507059e+37 }
 0x3d6   :  { %v1732_v63 = vpop.eup %1731 }
 0x3d7   :  { %v535_v9 = vmul.f32 %v1732_v63, %v533_v0  ;;  %vm540_vm13 = vweird.f32 %v1732_v63  ;;  %v1734_v52 = vpop.eup %1733  ;;  %v235_v0 = vadd.f32 %v234_v23, %v2113_v60 }
 0x3d8   :  { %vm541_vm15 = vmor %vm539_vm14, %vm540_vm13 }
 0x3d9   :  { %v594_v6 = vpop.f32.mrf.mxu1  ;;  %v536_v11 = vsub.f32 1.0, %v535_v9 }
 0x3da   :  { %v611_v12 = vadd.f32 %v594_v6, %v206_v5 }
 0x3db   :  { %v537_v14 = vmul.f32 %v1732_v63, %v536_v11 }
 0x3dc   :  { %v1650_v19 = vmul.f32 -1.442695, %v611_v12 }
 0x3dd   :  { %v538_v32 = vadd.f32 %v1732_v63, %v537_v14 }
 0x3de   :  { %1735 = vpow2.f32 %v1650_v19 }
 0x3df   :  { %v607_v22 = vpop.f32.mrf.mxu3  ;;  %v542_v28 = vsel %vm541_vm15, %v1732_v63, %v538_v32 }
 0x3e0   :  { %v2359_v53 = vsel %vm544_vm0, %v546_v20, %v542_v28  ;;  %v612_v9 = vadd.f32 %v607_v22, %v235_v0 }
 0x3e1   :  { %v596_v54 = vpop.f32.mrf.mxu1  ;;  %v570_v56 = vmul.f32 %v1734_v52, %v2359_v53 }
 0x3e2   :  { %v1651_v23 = vmul.f32 -1.442695, %v612_v9 }
 0x3e3   :  { %572 = vrot.lane.b32.xlu0 %v570_v56, %s1972_s3 }
 0x3e4   :  { %v1736_v58 = vpop.eup %1735 }
 0x3e5   :  { %v616_v59 = vadd.f32 1.0, %v1736_v58 }
 0x3e7   :  { %1737 = vrcp.f32 %v616_v59  ;;  %v609_v62 = vpop.f32.mrf.mxu3  ;;  %v628_v63 = vand.u32 2147483648, %v616_v59  ;;  %v626_v13 = vand.u32 2147483647, %v616_v59  ;;  %vm622_vm3 = vweird.f32 %v616_v59 }
 0x3e8   :  { %1739 = vtanh.f32 %v612_v9 }
 0x3e9   :  { %v629_v18 = vor.u32 1.1754944e-38, %v628_v63  ;;  %vm627_vm5 = vcmp.eq.f32.partialorder %v626_v13, 8.507059e+37  ;;  %1741 = vpow2.f32 %v1651_v23 }
 0x3ed   :  { %v1738_v5 = vpop.eup %1737 }
 0x3ee   :  { %v618_v6 = vmul.f32 %v1738_v5, %v616_v59  ;;  %vm623_vm2 = vweird.f32 %v1738_v5  ;;  %v1740_v32 = vpop.eup %1739 }
 0x3ef   :  { %vm624_vm4 = vmor %vm622_vm3, %vm623_vm2  ;;  %v1742_v22 = vpop.eup %1741 }
 0x3f0   :  { %v619_v11 = vsub.f32 1.0, %v618_v6  ;;  %v636_v52 = vadd.f32 1.0, %v1742_v22 }
 0x3f2   :  { %v620_v12 = vmul.f32 %v1738_v5, %v619_v11  ;;  %1743 = vrcp.f32 %v636_v52  ;;  %v648_v11 = vand.u32 2147483648, %v636_v52  ;;  %vm642_vm7 = vweird.f32 %v636_v52 }
 0x3f3   :  { %v646_v9 = vand.u32 2147483647, %v636_v52 }
 0x3f4   :  { %v621_v14 = vadd.f32 %v1738_v5, %v620_v12  ;;  %v649_v12 = vor.u32 1.1754944e-38, %v648_v11 }
 0x3f5   :  { %vm647_vm9 = vcmp.eq.f32.partialorder %v646_v9, 8.507059e+37 }
 0x3f6   :  { %v625_v19 = vsel %vm624_vm4, %v1738_v5, %v621_v14 }
 0x3f7   :  { %v630_v20 = vsel %vm627_vm5, %v629_v18, %v625_v19  ;;  %v1647_v19 = vmul.f32 -1.442695, %v2356_v8  ;;  %v569_v8 = vmul.f32 %v2359_v53, %v2303_v2 }
 0x3f8   :  { %v653_v28 = vmul.f32 %v1740_v32, %v630_v20  ;;  %v1744_v54 = vpop.eup %1743  ;;  %v652_v59 = vmul.f32 %v630_v20, %v2286_v26 }
 0x3f9   :  { %v638_v56 = vmul.f32 %v1744_v54, %v636_v52  ;;  %vm643_vm6 = vweird.f32 %v1744_v54 }
 0x3fa   :  { %655 = vrot.lane.b32.xlu1 %v653_v28, %s1972_s3  ;;  %vm644_vm8 = vmor %vm642_vm7, %vm643_vm6 }
 0x3fb   :  { %v639_v58 = vsub.f32 1.0, %v638_v56 }
 0x3fd   :  { %v640_v62 = vmul.f32 %v1744_v54, %v639_v58 }
 0x3ff   :  { %v641_v5 = vadd.f32 %v1744_v54, %v640_v62 }
 0x401   :  { %v645_v63 = vsel %vm644_vm8, %v1744_v54, %v641_v5 }
 0x402   :  { %v650_v14 = vsel %vm647_vm9, %v649_v12, %v645_v63 }
 0x455   :  { %v573_v54 = vpop.permute.xlu0 %572 }
 0x456   :  { %v2380_v56 = vadd.f32 %v573_v54, %v569_v8 }
 0x46c   :  { %v656_v0 = vpop.permute.xlu1 %655 }
 0x46d   :  { %v2366_v6 = vadd.f32 %v656_v0, %v652_v59 }
 0x46f   :  { %1745 = vtanh.f32 %v2366_v6 }
 0x470   :  { %1747 = vpow2.f32 %v1647_v19 }
 0x475   :  { %v1746_v13 = vpop.eup %1745 }
 0x476   :  { %v660_v18 = vmul.f32 %v1746_v13, %v650_v14  ;;  %v1748_v32 = vpop.eup %1747  ;;  %v208_v14 = vadd.f32 %v2335_v35, %v2110_v49 }
 0x477   :  { %v553_v20 = vadd.f32 1.0, %v1748_v32 }
 0x478   :  { %662 = vrot.lane.b32.xlu1 %v660_v18, %s1972_s3  ;;  %v741_v26 = vpack.c.bf16 %v660_v18, %v660_v18 }
 0x479   :  { %1749 = vrcp.f32 %v553_v20  ;;  %v565_v59 = vand.u32 2147483648, %v553_v20  ;;  %vm559_vm11 = vweird.f32 %v553_v20  ;;  %v563_v2 = vand.u32 2147483647, %v553_v20 }
 0x47a   :  { %743 = vrot.lane.b32.xlu2 %v741_v26, %s1972_s3  ;;  %1751 = vtanh.f32 %v2380_v56 }
 0x47b   :  { %v566_v5 = vor.u32 1.1754944e-38, %v565_v59  ;;  %vm564_vm13 = vcmp.eq.f32.partialorder %v563_v2, 8.507059e+37 }
 0x47f   :  { %v1750_v28 = vpop.eup %1749 }
 0x480   :  { %v555_v22 = vmul.f32 %v1750_v28, %v553_v20  ;;  %vm560_vm1 = vweird.f32 %v1750_v28  ;;  %v1752_v0 = vpop.eup %1751 }
 0x481   :  { %vm561_vm12 = vmor %vm559_vm11, %vm560_vm1 }
 0x482   :  { %v556_v52 = vsub.f32 1.0, %v555_v22 }
 0x484   :  { %v557_v58 = vmul.f32 %v1750_v28, %v556_v52  ;;  %v237_v52 = vadd.f32 %v2333_v34, %v2113_v60 }
 0x486   :  { %v558_v62 = vadd.f32 %v1750_v28, %v557_v58 }
 0x488   :  { %v562_v53 = vsel %vm561_vm12, %v1750_v28, %v558_v62 }
 0x489   :  { %v567_v11 = vsel %vm564_vm13, %v566_v5, %v562_v53 }
 0x48a   :  { %v577_v9 = vmul.f32 %v1752_v0, %v567_v11 }
 0x4d4   :  { %v744_v23 = vpop.permute.xlu2 %743 }
 0x4d5   :  { %1654 = vmatmul.msk.bf16.vlgmr.msrb.gmra.mxu2 %vm255_vm10, %v744_v23  ;;  %1655 = vmatmul.msk.bf16.vlgmr.msra.gmra.mxu3 %vm255_vm10, %v744_v23 }
 0x4d6   :  { %1078 = vmatpush.bf16.msrb.mxu2 %v2031_v3  ;;  %1091 = vmatpush.bf16.msra.mxu3 %v2055_v16 }
 0x4da   :  { %1079 = vmatpush.bf16.msrb.mxu2 %v2040_v10  ;;  %1092 = vmatpush.bf16.msra.mxu3 %v2070_v25 }
 0x4de   :  { %1080 = vmatpush.bf16.msrb.mxu2 %v2068_v24  ;;  %1093 = vmatpush.bf16.msra.mxu3 %v2089_v37 }
 0x4e2   :  { %1081 = vmatpush.bf16.msrb.mxu2 %v2092_v38  ;;  %1094 = vmatpush.bf16.msra.mxu3 %v2101_v45 }
 0x4ea   :  { %v663_v63 = vpop.permute.xlu1 %662 }
 0x4eb   :  { %v665_v12 = vsel %vm255_vm10, %v663_v63, %v577_v9 }
 0x4ec   :  { %v666_v13 = vpack.c.bf16 %v665_v12, %v665_v12 }
 0x4ee   :  { %675 = vmatmul.bf16.vlgmr.msra.gmra.mxu0 %v666_v13  ;;  %688 = vmatmul.bf16.vlgmr.msrb.gmra.mxu1 %v666_v13 }
 0x4ef   :  { %993 = vmatpush.bf16.msra.mxu0 %v2120_v21  ;;  %1006 = vmatpush.bf16.msrb.mxu1 %v2122_v27 }
 0x4f3   :  { %994 = vmatpush.bf16.msra.mxu0 %v2125_v30  ;;  %1007 = vmatpush.bf16.msrb.mxu1 %v2129_v31 }
 0x4f7   :  { %995 = vmatpush.bf16.msra.mxu0 %v2135_v39  ;;  %1008 = vmatpush.bf16.msrb.mxu1 %v2141_v41 }
 0x4fb   :  { %996 = vmatpush.bf16.msra.mxu0 %v2145_v47  ;;  %1009 = vmatpush.bf16.msrb.mxu1 %v2149_v50 }
 0x4ff   :  { %997 = vmatpush.bf16.msra.mxu0 %v2153_v55  ;;  %1010 = vmatpush.bf16.msrb.mxu1 %v2158_v57 }
 0x503   :  { %998 = vmatpush.bf16.msra.mxu0 %v2167_v4  ;;  %1011 = vmatpush.bf16.msrb.mxu1 %v2173_v7 }
 0x507   :  { %999 = vmatpush.bf16.msra.mxu0 %v2184_v15  ;;  %1012 = vmatpush.bf16.msrb.mxu1 %v2191_v17 }
 0x50b   :  { %1000 = vmatpush.bf16.msra.mxu0 %v2195_v29  ;;  %1013 = vmatpush.bf16.msrb.mxu1 %v2199_v33 }
 0x558   :  { %v757_v18 = vpop.f32.mrf.mxu2  ;;  %v770_v26 = vpop.f32.mrf.mxu3 }
 0x559   :  { %v774_v19 = vadd.f32 %v757_v18, %v208_v14  ;;  %v775_v54 = vadd.f32 %v770_v26, %v237_v52 }
 0x55b   :  { %v1656_v32 = vmul.f32 -1.442695, %v774_v19 }
 0x55d   :  { %1753 = vpow2.f32 %v1656_v32 }
 0x560   :  { %v759_v20 = vpop.f32.mrf.mxu2  ;;  %v772_v28 = vpop.f32.mrf.mxu3 }
 0x563   :  { %v1754_v23 = vpop.eup %1753 }
 0x564   :  { %v779_v22 = vadd.f32 1.0, %v1754_v23 }
 0x566   :  { %1755 = vrcp.f32 %v779_v22  ;;  %v791_v0 = vand.u32 2147483648, %v779_v22  ;;  %v789_v11 = vand.u32 2147483647, %v779_v22  ;;  %vm785_vm15 = vweird.f32 %v779_v22 }
 0x567   :  { %1757 = vtanh.f32 %v775_v54 }
 0x568   :  { %v792_v34 = vor.u32 1.1754944e-38, %v791_v0  ;;  %vm790_vm2 = vcmp.eq.f32.partialorder %v789_v11, 8.507059e+37  ;;  %v1657_v11 = vmul.f32 -1.442695, %v775_v54 }
 0x56b   :  { %v676_v8 = vpop.f32.mrf.mxu0  ;;  %v689_v58 = vpop.f32.mrf.mxu1 }
 0x56c   :  { %v1756_v62 = vpop.eup %1755  ;;  %v677_v59 = vadd.f32 %v676_v8, %v2255_v43  ;;  %v690_v28 = vadd.f32 %v689_v58, %v2259_v61 }
 0x56d   :  { %v781_v35 = vmul.f32 %v1756_v62, %v779_v22  ;;  %vm786_vm14 = vweird.f32 %v1756_v62  ;;  %v1758_v13 = vpop.eup %1757 }
 0x56e   :  { %v1652_v2 = vmul.f32 -1.442695, %v677_v59  ;;  %vm787_vm0 = vmor %vm785_vm15, %vm786_vm14 }
 0x56f   :  { %v782_v53 = vsub.f32 1.0, %v781_v35 }
 0x570   :  { %1759 = vpow2.f32 %v1652_v2 }
 0x571   :  { %v783_v5 = vmul.f32 %v1756_v62, %v782_v53 }
 0x573   :  { %v678_v9 = vpop.f32.mrf.mxu0  ;;  %v691_v63 = vpop.f32.mrf.mxu1  ;;  %v784_v12 = vadd.f32 %v1756_v62, %v783_v5 }
 0x575   :  { %v788_v14 = vsel %vm787_vm0, %v1756_v62, %v784_v12 }
 0x576   :  { %v1760_v18 = vpop.eup %1759  ;;  %v793_v26 = vsel %vm790_vm2, %v792_v34, %v788_v14 }
 0x577   :  { %v696_v19 = vadd.f32 1.0, %v1760_v18  ;;  %v816_v32 = vmul.f32 %v1758_v13, %v793_v26  ;;  %v815_v14 = vmul.f32 %v793_v26, %v2366_v6  ;;  %v1653_v26 = vmul.f32 -1.442695, %v690_v28 }
 0x579   :  { %1761 = vrcp.f32 %v696_v19  ;;  %818 = vrot.lane.b32.xlu2 %v816_v32, %s1972_s3  ;;  %v708_v8 = vand.u32 2147483648, %v696_v19  ;;  %v706_v59 = vand.u32 2147483647, %v696_v19  ;;  %vm702_vm4 = vweird.f32 %v696_v19 }
 0x57a   :  { %1763 = vtanh.f32 %v690_v28 }
 0x57b   :  { %v709_v62 = vor.u32 1.1754944e-38, %v708_v8  ;;  %vm707_vm6 = vcmp.eq.f32.partialorder %v706_v59, 8.507059e+37  ;;  %1765 = vpow2.f32 %v1657_v11 }
 0x57f   :  { %v1762_v20 = vpop.eup %1761 }
 0x580   :  { %v698_v23 = vmul.f32 %v1762_v20, %v696_v19  ;;  %vm703_vm3 = vweird.f32 %v1762_v20  ;;  %v1764_v53 = vpop.eup %1763 }
 0x581   :  { %vm704_vm5 = vmor %vm702_vm4, %vm703_vm3  ;;  %v1766_v58 = vpop.eup %1765 }
 0x582   :  { %v699_v52 = vsub.f32 1.0, %v698_v23  ;;  %v799_v9 = vadd.f32 1.0, %v1766_v58 }
 0x584   :  { %v700_v22 = vmul.f32 %v1762_v20, %v699_v52  ;;  %1767 = vrcp.f32 %v799_v9  ;;  %vm805_vm8 = vweird.f32 %v799_v9  ;;  %v809_v54 = vand.u32 2147483647, %v799_v9 }
 0x586   :  { %v701_v35 = vadd.f32 %v1762_v20, %v700_v22  ;;  %vm810_vm1 = vcmp.eq.f32.partialorder %v809_v54, 8.507059e+37 }
 0x588   :  { %v705_v2 = vsel %vm704_vm5, %v1762_v20, %v701_v35  ;;  %v811_v20 = vand.u32 2147483648, %v799_v9 }
 0x589   :  { %v710_v0 = vsel %vm707_vm6, %v709_v62, %v705_v2 }
 0x58a   :  { %v733_v5 = vmul.f32 %v1764_v53, %v710_v0  ;;  %v1768_v63 = vpop.eup %1767  ;;  %v812_v52 = vor.u32 1.1754944e-38, %v811_v20  ;;  %v732_v58 = vmul.f32 %v710_v0, %v2380_v56 }
 0x58b   :  { %v801_v12 = vmul.f32 %v1768_v63, %v799_v9  ;;  %vm806_vm7 = vweird.f32 %v1768_v63 }
 0x58c   :  { %735 = vrot.lane.b32.xlu1 %v733_v5, %s1972_s3  ;;  %vm807_vm9 = vmor %vm805_vm8, %vm806_vm7 }
 0x58d   :  { %v802_v34 = vsub.f32 1.0, %v801_v12 }
 0x58f   :  { %v803_v13 = vmul.f32 %v1768_v63, %v802_v34 }
 0x591   :  { %v804_v32 = vadd.f32 %v1768_v63, %v803_v13 }
 0x593   :  { %v808_v23 = vsel %vm807_vm9, %v1768_v63, %v804_v32 }
 0x594   :  { %v813_v22 = vsel %vm810_vm1, %v812_v52, %v808_v23 }
 0x5d3   :  { %v819_v18 = vpop.permute.xlu2 %818 }
 0x5d4   :  { %v2413_v19 = vadd.f32 %v819_v18, %v815_v14 }
 0x5d6   :  { %1769 = vtanh.f32 %v2413_v19 }
 0x5d7   :  { %1771 = vpow2.f32 %v1653_v26 }
 0x5dc   :  { %v1770_v8 = vpop.eup %1769 }
 0x5dd   :  { %v823_v59 = vmul.f32 %v1770_v8, %v813_v22  ;;  %v1772_v35 = vpop.eup %1771 }
 0x5de   :  { %v716_v62 = vadd.f32 1.0, %v1772_v35 }
 0x5df   :  { %825 = vrot.lane.b32.xlu2 %v823_v59, %s1972_s3  ;;  %v904_v6 = vpack.c.bf16 %v823_v59, %v823_v59 }
 0x5e0   :  { %1773 = vrcp.f32 %v716_v62  ;;  %v728_v34 = vand.u32 2147483648, %v716_v62  ;;  %vm722_vm12 = vweird.f32 %v716_v62  ;;  %v726_v28 = vand.u32 2147483647, %v716_v62 }
 0x5e1   :  { %906 = vrot.lane.b32.xlu0 %v904_v6, %s1972_s3 }
 0x5e2   :  { %v729_v18 = vor.u32 1.1754944e-38, %v728_v34  ;;  %vm727_vm14 = vcmp.eq.f32.partialorder %v726_v28, 8.507059e+37 }
 0x5e6   :  { %v1774_v2 = vpop.eup %1773 }
 0x5e7   :  { %v718_v53 = vmul.f32 %v1774_v2, %v716_v62  ;;  %vm723_vm11 = vweird.f32 %v1774_v2 }
 0x5e8   :  { %vm724_vm13 = vmor %vm722_vm12, %vm723_vm11 }
 0x5e9   :  { %v719_v5 = vsub.f32 1.0, %v718_v53 }
 0x5eb   :  { %v720_v63 = vmul.f32 %v1774_v2, %v719_v5 }
 0x5ed   :  { %v721_v12 = vadd.f32 %v1774_v2, %v720_v63 }
 0x5ef   :  { %v725_v13 = vsel %vm724_vm13, %v1774_v2, %v721_v12  ;;  %v211_v2 = vadd.f32 %v2339_v40, %v2110_v49 }
 0x5f0   :  { %v730_v32 = vsel %vm727_vm14, %v729_v18, %v725_v13 }
 0x5fe   :  { %v736_v11 = vpop.permute.xlu1 %735 }
 0x5ff   :  { %v2419_v9 = vadd.f32 %v736_v11, %v732_v58 }
 0x601   :  { %1775 = vtanh.f32 %v2419_v9 }
 0x607   :  { %v1776_v14 = vpop.eup %1775 }
 0x608   :  { %v740_v20 = vmul.f32 %v1776_v14, %v730_v32 }
 0x639   :  { %v826_v54 = vpop.permute.xlu2 %825 }
 0x63a   :  { %v828_v56 = vsel %vm255_vm10, %v826_v54, %v740_v20 }
 0x63b   :  { %v829_v0 = vpack.c.bf16 %v828_v56, %v828_v56 }
 0x63d   :  { %838 = vmatmul.bf16.vlgmr.msra.gmra.mxu2 %v829_v0  ;;  %851 = vmatmul.bf16.vlgmr.msrb.gmra.mxu3 %v829_v0 }
 0x63e   :  { %1156 = vmatpush.bf16.msra.mxu2 %v2120_v21  ;;  %1169 = vmatpush.bf16.msrb.mxu3 %v2122_v27 }
 0x642   :  { %1157 = vmatpush.bf16.msra.mxu2 %v2125_v30  ;;  %1170 = vmatpush.bf16.msrb.mxu3 %v2129_v31 }
 0x646   :  { %1158 = vmatpush.bf16.msra.mxu2 %v2135_v39  ;;  %1171 = vmatpush.bf16.msrb.mxu3 %v2141_v41 }
 0x64a   :  { %1159 = vmatpush.bf16.msra.mxu2 %v2145_v47  ;;  %1172 = vmatpush.bf16.msrb.mxu3 %v2149_v50 }
 0x64e   :  { %1160 = vmatpush.bf16.msra.mxu2 %v2153_v55  ;;  %1173 = vmatpush.bf16.msrb.mxu3 %v2158_v57 }
 0x652   :  { %1161 = vmatpush.bf16.msra.mxu2 %v2167_v4  ;;  %1174 = vmatpush.bf16.msrb.mxu3 %v2173_v7 }
 0x653   :  { %v907_v23 = vpop.permute.xlu0 %906 }
 0x654   :  { %1660 = vmatmul.msk.bf16.vlgmr.msrb.gmra.mxu0 %vm255_vm10, %v907_v23  ;;  %1661 = vmatmul.msk.bf16.vlgmr.msra.gmra.mxu1 %vm255_vm10, %v907_v23 }
 0x655   :  { %1241 = vmatpush.bf16.msrb.mxu0 %v2031_v3  ;;  %1254 = vmatpush.bf16.msra.mxu1 %v2055_v16 }
 0x656   :  { %1162 = vmatpush.bf16.msra.mxu2 %v2184_v15  ;;  %1175 = vmatpush.bf16.msrb.mxu3 %v2191_v17 }
 0x659   :  { %1242 = vmatpush.bf16.msrb.mxu0 %v2040_v10  ;;  %1255 = vmatpush.bf16.msra.mxu1 %v2070_v25 }
 0x65a   :  { %1163 = vmatpush.bf16.msra.mxu2 %v2195_v29  ;;  %1176 = vmatpush.bf16.msrb.mxu3 %v2199_v33 }
 0x65d   :  { %1243 = vmatpush.bf16.msrb.mxu0 %v2068_v24  ;;  %1256 = vmatpush.bf16.msra.mxu1 %v2089_v37 }
 0x661   :  { %1244 = vmatpush.bf16.msrb.mxu0 %v2092_v38  ;;  %1257 = vmatpush.bf16.msra.mxu1 %v2101_v45 }
 0x6c0   :  { %v839_v52 = vpop.f32.mrf.mxu2  ;;  %v852_v8 = vpop.f32.mrf.mxu3 }
 0x6c1   :  { %v840_v22 = vadd.f32 %v839_v52, %v2255_v43  ;;  %v2453_v63 = vadd.f32 %v852_v8, %v2259_v61 }
 0x6c3   :  { %v1658_v59 = vmul.f32 -1.442695, %v840_v22 }
 0x6c5   :  { %1777 = vpow2.f32 %v1658_v59  ;;  %v240_v59 = vadd.f32 %v2337_v36, %v2113_v60 }
 0x6c8   :  { %v841_v6 = vpop.f32.mrf.mxu2  ;;  %v854_v26 = vpop.f32.mrf.mxu3 }
 0x6cb   :  { %v1778_v35 = vpop.eup %1777 }
 0x6cc   :  { %v859_v62 = vadd.f32 1.0, %v1778_v35 }
 0x6ce   :  { %1779 = vrcp.f32 %v859_v62  ;;  %v871_v13 = vand.u32 2147483648, %v859_v62  ;;  %v869_v20 = vand.u32 2147483647, %v859_v62  ;;  %vm865_vm0 = vweird.f32 %v859_v62 }
 0x6d0   :  { %v872_v56 = vor.u32 1.1754944e-38, %v871_v13  ;;  %vm870_vm3 = vcmp.eq.f32.partialorder %v869_v20, 8.507059e+37 }
 0x6d1   :  { %v920_v53 = vpop.f32.mrf.mxu0  ;;  %v933_v5 = vpop.f32.mrf.mxu1 }
 0x6d2   :  { %v937_v11 = vadd.f32 %v920_v53, %v211_v2  ;;  %v938_v26 = vadd.f32 %v933_v5, %v240_v59 }
 0x6d4   :  { %v1780_v58 = vpop.eup %1779  ;;  %v1662_v12 = vmul.f32 -1.442695, %v937_v11  ;;  %v1663_v36 = vmul.f32 -1.442695, %v938_v26 }
 0x6d5   :  { %v861_v34 = vmul.f32 %v1780_v58, %v859_v62  ;;  %vm866_vm15 = vweird.f32 %v1780_v58 }
 0x6d6   :  { %1781 = vpow2.f32 %v1662_v12  ;;  %vm867_vm2 = vmor %vm865_vm0, %vm866_vm15 }
 0x6d7   :  { %v862_v28 = vsub.f32 1.0, %v861_v34  ;;  %1783 = vtanh.f32 %v2453_v63 }
 0x6d9   :  { %v922_v14 = vpop.f32.mrf.mxu0  ;;  %v935_v18 = vpop.f32.mrf.mxu1  ;;  %v863_v32 = vmul.f32 %v1780_v58, %v862_v28 }
 0x6db   :  { %v864_v40 = vadd.f32 %v1780_v58, %v863_v32 }
 0x6dc   :  { %v1782_v54 = vpop.eup %1781 }
 0x6dd   :  { %v942_v0 = vadd.f32 1.0, %v1782_v54  ;;  %v868_v23 = vsel %vm867_vm2, %v1780_v58, %v864_v40  ;;  %v1784_v52 = vpop.eup %1783 }
 0x6de   :  { %v873_v8 = vsel %vm870_vm3, %v872_v56, %v868_v23 }
 0x6df   :  { %1785 = vrcp.f32 %v942_v0  ;;  %v896_v22 = vmul.f32 %v1784_v52, %v873_v8  ;;  %v954_v62 = vand.u32 2147483648, %v942_v0  ;;  %v952_v11 = vand.u32 2147483647, %v942_v0 }
 0x6e0   :  { %1787 = vtanh.f32 %v938_v26  ;;  %vm948_vm5 = vweird.f32 %v942_v0 }
 0x6e1   :  { %898 = vrot.lane.b32.xlu2 %v896_v22, %s1972_s3  ;;  %v955_v12 = vor.u32 1.1754944e-38, %v954_v62  ;;  %vm953_vm7 = vcmp.eq.f32.partialorder %v952_v11, 8.507059e+37  ;;  %1789 = vpow2.f32 %v1663_v36 }
 0x6e5   :  { %v1786_v6 = vpop.eup %1785 }
 0x6e6   :  { %v944_v35 = vmul.f32 %v1786_v6, %v942_v0  ;;  %vm949_vm4 = vweird.f32 %v1786_v6  ;;  %v1788_v28 = vpop.eup %1787 }
 0x6e7   :  { %vm950_vm6 = vmor %vm948_vm5, %vm949_vm4  ;;  %v1790_v5 = vpop.eup %1789 }
 0x6e8   :  { %v945_v2 = vsub.f32 1.0, %v944_v35  ;;  %v962_v18 = vadd.f32 1.0, %v1790_v5 }
 0x6ea   :  { %v946_v53 = vmul.f32 %v1786_v6, %v945_v2  ;;  %1791 = vrcp.f32 %v962_v18  ;;  %v974_v22 = vand.u32 2147483648, %v962_v18  ;;  %vm968_vm9 = vweird.f32 %v962_v18 }
 0x6eb   :  { %v972_v59 = vand.u32 2147483647, %v962_v18 }
 0x6ec   :  { %v947_v58 = vadd.f32 %v1786_v6, %v946_v53  ;;  %v975_v26 = vor.u32 1.1754944e-38, %v974_v22  ;;  %v1659_v53 = vmul.f32 -1.442695, %v2453_v63 }
 0x6ed   :  { %vm973_vm11 = vcmp.eq.f32.partialorder %v972_v59, 8.507059e+37 }
 0x6ee   :  { %v951_v34 = vsel %vm950_vm6, %v1786_v6, %v947_v58 }
 0x6ef   :  { %v956_v13 = vsel %vm953_vm7, %v955_v12, %v951_v34 }
 0x6f0   :  { %v979_v14 = vmul.f32 %v1788_v28, %v956_v13  ;;  %v1792_v32 = vpop.eup %1791  ;;  %v978_v56 = vmul.f32 %v956_v13, %v2413_v19 }
 0x6f1   :  { %v964_v20 = vmul.f32 %v1792_v32, %v962_v18  ;;  %vm969_vm8 = vweird.f32 %v1792_v32 }
 0x6f2   :  { %981 = vrot.lane.b32.xlu0 %v979_v14, %s1972_s3  ;;  %vm970_vm1 = vmor %vm968_vm9, %vm969_vm8  ;;  %v895_v14 = vmul.f32 %v873_v8, %v2419_v9 }
 0x6f3   :  { %v965_v40 = vsub.f32 1.0, %v964_v20 }
 0x6f5   :  { %v966_v54 = vmul.f32 %v1792_v32, %v965_v40 }
 0x6f7   :  { %v967_v52 = vadd.f32 %v1792_v32, %v966_v54 }
 0x6f9   :  { %v971_v6 = vsel %vm970_vm1, %v1792_v32, %v967_v52 }
 0x6fa   :  { %v976_v2 = vsel %vm973_vm11, %v975_v26, %v971_v6 }
 0x73b   :  { %v899_v13 = vpop.permute.xlu2 %898 }
 0x73c   :  { %v2468_v36 = vadd.f32 %v899_v13, %v895_v14 }
 0x764   :  { %v982_v0 = vpop.permute.xlu0 %981 }
 0x765   :  { %v2461_v23 = vadd.f32 %v982_v0, %v978_v56 }
 0x767   :  { %1793 = vtanh.f32 %v2461_v23 }
 0x768   :  { %1795 = vpow2.f32 %v1659_v53 }
 0x76d   :  { %v1794_v35 = vpop.eup %1793 }
 0x76e   :  { %v986_v62 = vmul.f32 %v1794_v35, %v976_v2  ;;  %v1796_v11 = vpop.eup %1795 }
 0x76f   :  { %v879_v58 = vadd.f32 1.0, %v1796_v11 }
 0x770   :  { %988 = vrot.lane.b32.xlu0 %v986_v62, %s1972_s3  ;;  %v1067_v19 = vpack.c.bf16 %v986_v62, %v986_v62 }
 0x771   :  { %1797 = vrcp.f32 %v879_v58  ;;  %v891_v32 = vand.u32 2147483648, %v879_v58  ;;  %vm885_vm13 = vweird.f32 %v879_v58  ;;  %v889_v63 = vand.u32 2147483647, %v879_v58 }
 0x772   :  { %1069 = vrot.lane.b32.xlu1 %v1067_v19, %s1972_s3  ;;  %1799 = vtanh.f32 %v2468_v36 }
 0x773   :  { %v892_v54 = vor.u32 1.1754944e-38, %v891_v32  ;;  %vm890_vm15 = vcmp.eq.f32.partialorder %v889_v63, 8.507059e+37 }
 0x777   :  { %v1798_v12 = vpop.eup %1797 }
 0x778   :  { %v881_v34 = vmul.f32 %v1798_v12, %v879_v58  ;;  %vm886_vm12 = vweird.f32 %v1798_v12  ;;  %v1800_v40 = vpop.eup %1799 }
 0x779   :  { %vm887_vm14 = vmor %vm885_vm13, %vm886_vm12 }
 0x77a   :  { %v882_v28 = vsub.f32 1.0, %v881_v34  ;;  %v242_v34 = vadd.f32 %v2341_v42, %v2113_v60 }
 0x77c   :  { %v883_v5 = vmul.f32 %v1798_v12, %v882_v28 }
 0x77e   :  { %v884_v18 = vadd.f32 %v1798_v12, %v883_v5 }
 0x780   :  { %v888_v20 = vsel %vm887_vm14, %v1798_v12, %v884_v18 }
 0x781   :  { %v893_v56 = vsel %vm890_vm15, %v892_v54, %v888_v20 }
 0x782   :  { %v903_v0 = vmul.f32 %v1800_v40, %v893_v56 }
 0x7e2   :  { %v989_v52 = vpop.permute.xlu0 %988 }
 0x7e3   :  { %v991_v9 = vsel %vm255_vm10, %v989_v52, %v903_v0 }
 0x7e4   :  { %v992_v8 = vpack.c.bf16 %v991_v9, %v991_v9  ;;  %v1070_v22 = vpop.permute.xlu1 %1069 }
 0x7e5   :  { %1666 = vmatmul.msk.bf16.vlgmr.msrb.gmra.mxu2 %vm255_vm10, %v1070_v22  ;;  %1667 = vmatmul.msk.bf16.vlgmr.msra.gmra.mxu3 %vm255_vm10, %v1070_v22 }
 0x7e6   :  { %1001 = vmatmul.bf16.vlgmr.msra.gmra.mxu0 %v992_v8  ;;  %1014 = vmatmul.bf16.vlgmr.msrb.gmra.mxu1 %v992_v8 }
 0x7e7   :  { %1319 = vmatpush.bf16.msra.mxu0 %v2120_v21  ;;  %1332 = vmatpush.bf16.msrb.mxu1 %v2122_v27 }
 0x7e8   :  { %1404 = vmatpush.bf16.msrb.mxu2 %v2031_v3  ;;  %1417 = vmatpush.bf16.msra.mxu3 %v2055_v16 }
 0x7eb   :  { %1320 = vmatpush.bf16.msra.mxu0 %v2125_v30  ;;  %1333 = vmatpush.bf16.msrb.mxu1 %v2129_v31 }
 0x7ec   :  { %1405 = vmatpush.bf16.msrb.mxu2 %v2040_v10  ;;  %1418 = vmatpush.bf16.msra.mxu3 %v2070_v25  ;;  %v213_v25 = vadd.f32 %v2343_v1, %v2110_v49 }
 0x7ef   :  { %1321 = vmatpush.bf16.msra.mxu0 %v2135_v39  ;;  %1334 = vmatpush.bf16.msrb.mxu1 %v2141_v41 }
 0x7f0   :  { %1406 = vmatpush.bf16.msrb.mxu2 %v2068_v24  ;;  %1419 = vmatpush.bf16.msra.mxu3 %v2089_v37 }
 0x7f3   :  { %1322 = vmatpush.bf16.msra.mxu0 %v2145_v47  ;;  %1335 = vmatpush.bf16.msrb.mxu1 %v2149_v50 }
 0x7f4   :  { %1407 = vmatpush.bf16.msrb.mxu2 %v2092_v38  ;;  %1420 = vmatpush.bf16.msra.mxu3 %v2101_v45 }
 0x7f7   :  { %1323 = vmatpush.bf16.msra.mxu0 %v2153_v55  ;;  %1336 = vmatpush.bf16.msrb.mxu1 %v2158_v57 }
 0x7fb   :  { %1324 = vmatpush.bf16.msra.mxu0 %v2167_v4  ;;  %1337 = vmatpush.bf16.msrb.mxu1 %v2173_v7 }
 0x7ff   :  { %1325 = vmatpush.bf16.msra.mxu0 %v2184_v15  ;;  %1338 = vmatpush.bf16.msrb.mxu1 %v2191_v17 }
 0x803   :  { %1326 = vmatpush.bf16.msra.mxu0 %v2195_v29  ;;  %1339 = vmatpush.bf16.msrb.mxu1 %v2199_v33 }
 0x863   :  { %v1002_v3 = vpop.f32.mrf.mxu0  ;;  %v1015_v10 = vpop.f32.mrf.mxu1 }
 0x864   :  { %v1003_v16 = vadd.f32 %v1002_v3, %v2255_v43  ;;  %v2502_v12 = vadd.f32 %v1015_v10, %v2259_v61 }
 0x866   :  { %v1664_v24 = vmul.f32 -1.442695, %v1003_v16 }
 0x868   :  { %1801 = vpow2.f32 %v1664_v24  ;;  %v1083_v37 = vpop.f32.mrf.mxu2  ;;  %v1096_v38 = vpop.f32.mrf.mxu3 }
 0x869   :  { %v1100_v45 = vadd.f32 %v1083_v37, %v213_v25  ;;  %v1101_v5 = vadd.f32 %v1096_v38, %v242_v34 }
 0x86b   :  { %v1668_v59 = vmul.f32 -1.442695, %v1100_v45  ;;  %v1004_v6 = vpop.f32.mrf.mxu0  ;;  %v1017_v26 = vpop.f32.mrf.mxu1  ;;  %v1669_v38 = vmul.f32 -1.442695, %v1101_v5 }
 0x86d   :  { %1803 = vpow2.f32 %v1668_v59 }
 0x86e   :  { %v1802_v35 = vpop.eup %1801 }
 0x86f   :  { %v1022_v2 = vadd.f32 1.0, %v1802_v35 }
 0x870   :  { %v1085_v62 = vpop.f32.mrf.mxu2  ;;  %v1098_v19 = vpop.f32.mrf.mxu3 }
 0x871   :  { %1805 = vrcp.f32 %v1022_v2  ;;  %v1034_v13 = vand.u32 2147483648, %v1022_v2  ;;  %v1032_v32 = vand.u32 2147483647, %v1022_v2  ;;  %vm1028_vm2 = vweird.f32 %v1022_v2 }
 0x873   :  { %v1804_v53 = vpop.eup %1803  ;;  %v1035_v40 = vor.u32 1.1754944e-38, %v1034_v13  ;;  %vm1033_vm4 = vcmp.eq.f32.partialorder %v1032_v32, 8.507059e+37 }
 0x874   :  { %v1105_v11 = vadd.f32 1.0, %v1804_v53 }
 0x876   :  { %1807 = vrcp.f32 %v1105_v11  ;;  %v1117_v0 = vand.u32 2147483648, %v1105_v11  ;;  %v1115_v8 = vand.u32 2147483647, %v1105_v11  ;;  %vm1111_vm6 = vweird.f32 %v1105_v11 }
 0x877   :  { %v1806_v58 = vpop.eup %1805  ;;  %1809 = vtanh.f32 %v2502_v12 }
 0x878   :  { %v1024_v1 = vmul.f32 %v1806_v58, %v1022_v2  ;;  %vm1029_vm0 = vweird.f32 %v1806_v58  ;;  %1811 = vtanh.f32 %v1101_v5  ;;  %v1118_v10 = vor.u32 1.1754944e-38, %v1117_v0 }
 0x879   :  { %vm1030_vm3 = vmor %vm1028_vm2, %vm1029_vm0  ;;  %vm1116_vm8 = vcmp.eq.f32.partialorder %v1115_v8, 8.507059e+37  ;;  %1813 = vpow2.f32 %v1669_v38 }
 0x87a   :  { %v1025_v28 = vsub.f32 1.0, %v1024_v1 }
 0x87c   :  { %v1808_v14 = vpop.eup %1807  ;;  %v1026_v18 = vmul.f32 %v1806_v58, %v1025_v28 }
 0x87d   :  { %v1107_v63 = vmul.f32 %v1808_v14, %v1105_v11  ;;  %v1810_v42 = vpop.eup %1809  ;;  %vm1112_vm5 = vweird.f32 %v1808_v14 }
 0x87e   :  { %v1027_v20 = vadd.f32 %v1806_v58, %v1026_v18  ;;  %vm1113_vm7 = vmor %vm1111_vm6, %vm1112_vm5  ;;  %v1812_v24 = vpop.eup %1811  ;;  %v1665_v18 = vmul.f32 -1.442695, %v2502_v12 }
 0x87f   :  { %v1108_v54 = vsub.f32 1.0, %v1107_v63  ;;  %v1814_v45 = vpop.eup %1813 }
 0x880   :  { %v1031_v56 = vsel %vm1030_vm3, %v1806_v58, %v1027_v20  ;;  %v1125_v59 = vadd.f32 1.0, %v1814_v45 }
 0x881   :  { %v1036_v52 = vsel %vm1033_vm4, %v1035_v40, %v1031_v56  ;;  %v1109_v9 = vmul.f32 %v1808_v14, %v1108_v54 }
 0x882   :  { %v1059_v22 = vmul.f32 %v1810_v42, %v1036_v52  ;;  %1815 = vrcp.f32 %v1125_v59  ;;  %v1137_v58 = vand.u32 2147483648, %v1125_v59  ;;  %vm1131_vm1 = vweird.f32 %v1125_v59 }
 0x883   :  { %v1110_v3 = vadd.f32 %v1808_v14, %v1109_v9  ;;  %v1135_v1 = vand.u32 2147483647, %v1125_v59  ;;  %v1058_v42 = vmul.f32 %v1036_v52, %v2468_v36 }
 0x884   :  { %1061 = vrot.lane.b32.xlu0 %v1059_v22, %s1972_s3  ;;  %v1138_v28 = vor.u32 1.1754944e-38, %v1137_v58 }
 0x885   :  { %v1114_v16 = vsel %vm1113_vm7, %v1808_v14, %v1110_v3  ;;  %vm1136_vm12 = vcmp.eq.f32.partialorder %v1135_v1, 8.507059e+37 }
 0x886   :  { %v1119_v25 = vsel %vm1116_vm8, %v1118_v10, %v1114_v16 }
 0x887   :  { %v1142_v37 = vmul.f32 %v1812_v24, %v1119_v25  ;;  %v1141_v62 = vmul.f32 %v1119_v25, %v2461_v23 }
 0x888   :  { %v1816_v6 = vpop.eup %1815 }
 0x889   :  { %1144 = vrot.lane.b32.xlu1 %v1142_v37, %s1972_s3  ;;  %v1127_v26 = vmul.f32 %v1816_v6, %v1125_v59  ;;  %vm1132_vm9 = vweird.f32 %v1816_v6 }
 0x88a   :  { %vm1133_vm11 = vmor %vm1131_vm1, %vm1132_vm9 }
 0x88b   :  { %v1128_v35 = vsub.f32 1.0, %v1127_v26 }
 0x88d   :  { %v1129_v2 = vmul.f32 %v1816_v6, %v1128_v35 }
 0x88f   :  { %v1130_v11 = vadd.f32 %v1816_v6, %v1129_v2 }
 0x891   :  { %v1134_v34 = vsel %vm1133_vm11, %v1816_v6, %v1130_v11 }
 0x892   :  { %v1139_v14 = vsel %vm1136_vm12, %v1138_v28, %v1134_v34 }
 0x8f6   :  { %v1062_v0 = vpop.permute.xlu0 %1061 }
 0x8f7   :  { %v2519_v9 = vadd.f32 %v1062_v0, %v1058_v42 }
 0x8fb   :  { %v1145_v19 = vpop.permute.xlu1 %1144 }
 0x8fc   :  { %v2510_v53 = vadd.f32 %v1145_v19, %v1141_v62 }
 0x8fe   :  { %1817 = vtanh.f32 %v2510_v53 }
 0x8ff   :  { %1819 = vpow2.f32 %v1665_v18 }
 0x904   :  { %v1818_v13 = vpop.eup %1817 }
 0x905   :  { %v1149_v5 = vmul.f32 %v1818_v13, %v1139_v14  ;;  %v1820_v32 = vpop.eup %1819 }
 0x906   :  { %v1042_v63 = vadd.f32 1.0, %v1820_v32 }
 0x907   :  { %1151 = vrot.lane.b32.xlu1 %v1149_v5, %s1972_s3  ;;  %v1230_v23 = vpack.c.bf16 %v1149_v5, %v1149_v5 }
 0x908   :  { %1821 = vrcp.f32 %v1042_v63  ;;  %v1054_v22 = vand.u32 2147483648, %v1042_v63  ;;  %vm1048_vm14 = vweird.f32 %v1042_v63  ;;  %v1052_v3 = vand.u32 2147483647, %v1042_v63 }
 0x909   :  { %1232 = vrot.lane.b32.xlu2 %v1230_v23, %s1972_s3  ;;  %1823 = vtanh.f32 %v2519_v9 }
 0x90a   :  { %v1055_v24 = vor.u32 1.1754944e-38, %v1054_v22  ;;  %vm1053_vm0 = vcmp.eq.f32.partialorder %v1052_v3, 8.507059e+37 }
 0x90e   :  { %v1822_v20 = vpop.eup %1821 }
 0x90f   :  { %v1044_v54 = vmul.f32 %v1822_v20, %v1042_v63  ;;  %vm1049_vm13 = vweird.f32 %v1822_v20  ;;  %v1824_v16 = vpop.eup %1823 }
 0x910   :  { %vm1050_vm15 = vmor %vm1048_vm14, %vm1049_vm13 }
 0x911   :  { %v1045_v56 = vsub.f32 1.0, %v1044_v54 }
 0x913   :  { %v1046_v8 = vmul.f32 %v1822_v20, %v1045_v56 }
 0x915   :  { %v1047_v12 = vadd.f32 %v1822_v20, %v1046_v8 }
 0x917   :  { %v1051_v10 = vsel %vm1050_vm15, %v1822_v20, %v1047_v12 }
 0x918   :  { %v1056_v25 = vsel %vm1053_vm0, %v1055_v24, %v1051_v10 }
 0x919   :  { %v1066_v37 = vmul.f32 %v1824_v16, %v1056_v25 }
 0x963   :  { %v1233_v40 = vpop.permute.xlu2 %1232 }
 0x964   :  { %1672 = vmatmul.msk.bf16.vlgmr.msrb.gmra.mxu0 %vm255_vm10, %v1233_v40  ;;  %1673 = vmatmul.msk.bf16.vlgmr.msra.gmra.mxu1 %vm255_vm10, %v1233_v40 }
 0x979   :  { %v1152_v38 = vpop.permute.xlu1 %1151 }
 0x97a   :  { %v1154_v36 = vsel %vm255_vm10, %v1152_v38, %v1066_v37 }
 0x97b   :  { %v1155_v52 = vpack.c.bf16 %v1154_v36, %v1154_v36 }
 0x97d   :  { %1164 = vmatmul.bf16.vlgmr.msra.gmra.mxu2 %v1155_v52  ;;  %1177 = vmatmul.bf16.vlgmr.msrb.gmra.mxu3 %v1155_v52 }
 0x97e   :  { %1482 = vmatpush.bf16.msra.mxu2 %v2120_v21  ;;  %1495 = vmatpush.bf16.msrb.mxu3 %v2122_v27  ;;  %v216_v21 = vadd.f32 %v2347_v46, %v2110_v49 }
 0x982   :  { %1483 = vmatpush.bf16.msra.mxu2 %v2125_v30  ;;  %1496 = vmatpush.bf16.msrb.mxu3 %v2129_v31 }
 0x986   :  { %1484 = vmatpush.bf16.msra.mxu2 %v2135_v39  ;;  %1497 = vmatpush.bf16.msrb.mxu3 %v2141_v41 }
 0x98a   :  { %1485 = vmatpush.bf16.msra.mxu2 %v2145_v47  ;;  %1498 = vmatpush.bf16.msrb.mxu3 %v2149_v50 }
 0x98e   :  { %1486 = vmatpush.bf16.msra.mxu2 %v2153_v55  ;;  %1499 = vmatpush.bf16.msrb.mxu3 %v2158_v57  ;;  %v245_v57 = vadd.f32 %v2345_v44, %v2113_v60 }
 0x992   :  { %1487 = vmatpush.bf16.msra.mxu2 %v2167_v4  ;;  %1500 = vmatpush.bf16.msrb.mxu3 %v2173_v7 }
 0x996   :  { %1488 = vmatpush.bf16.msra.mxu2 %v2184_v15  ;;  %1501 = vmatpush.bf16.msrb.mxu3 %v2191_v17 }
 0x99a   :  { %1489 = vmatpush.bf16.msra.mxu2 %v2195_v29  ;;  %1502 = vmatpush.bf16.msrb.mxu3 %v2199_v33 }
 0x9e1   :  { %v1246_v27 = vpop.f32.mrf.mxu0  ;;  %v1259_v30 = vpop.f32.mrf.mxu1 }
 0x9e2   :  { %v1263_v31 = vadd.f32 %v1246_v27, %v216_v21  ;;  %v1264_v7 = vadd.f32 %v1259_v30, %v245_v57 }
 0x9e4   :  { %v1674_v39 = vmul.f32 -1.442695, %v1263_v31  ;;  %v1675_v8 = vmul.f32 -1.442695, %v1264_v7 }
 0x9e6   :  { %1825 = vpow2.f32 %v1674_v39 }
 0x9e9   :  { %v1248_v41 = vpop.f32.mrf.mxu0  ;;  %v1261_v47 = vpop.f32.mrf.mxu1 }
 0x9ec   :  { %v1826_v50 = vpop.eup %1825 }
 0x9ed   :  { %v1268_v55 = vadd.f32 1.0, %v1826_v50 }
 0x9ef   :  { %1827 = vrcp.f32 %v1268_v55  ;;  %v1280_v29 = vand.u32 2147483648, %v1268_v55  ;;  %v1278_v46 = vand.u32 2147483647, %v1268_v55  ;;  %vm1274_vm3 = vweird.f32 %v1268_v55 }
 0x9f0   :  { %1829 = vtanh.f32 %v1264_v7 }
 0x9f1   :  { %v1281_v59 = vor.u32 1.1754944e-38, %v1280_v29  ;;  %vm1279_vm5 = vcmp.eq.f32.partialorder %v1278_v46, 8.507059e+37 }
 0x9f5   :  { %v1828_v4 = vpop.eup %1827 }
 0x9f6   :  { %v1270_v15 = vmul.f32 %v1828_v4, %v1268_v55  ;;  %vm1275_vm2 = vweird.f32 %v1828_v4  ;;  %v1830_v26 = vpop.eup %1829 }
 0x9f7   :  { %vm1276_vm4 = vmor %vm1274_vm3, %vm1275_vm2 }
 0x9f8   :  { %v1271_v17 = vsub.f32 1.0, %v1270_v15 }
 0x9fa   :  { %v1272_v33 = vmul.f32 %v1828_v4, %v1271_v17 }
 0x9fc   :  { %v1273_v45 = vadd.f32 %v1828_v4, %v1272_v33 }
 0x9fe   :  { %v1277_v6 = vsel %vm1276_vm4, %v1828_v4, %v1273_v45 }
 0x9ff   :  { %v1282_v35 = vsel %vm1279_vm5, %v1281_v59, %v1277_v6 }
 0xa00   :  { %v1165_v2 = vpop.f32.mrf.mxu2  ;;  %v1178_v62 = vpop.f32.mrf.mxu3  ;;  %v1305_v44 = vmul.f32 %v1830_v26, %v1282_v35  ;;  %v1304_v25 = vmul.f32 %v1282_v35, %v2510_v53 }
 0xa01   :  { %v1166_v19 = vadd.f32 %v1165_v2, %v2255_v43  ;;  %v1179_v14 = vadd.f32 %v1178_v62, %v2259_v61 }
 0xa02   :  { %1307 = vrot.lane.b32.xlu2 %v1305_v44, %s1972_s3 }
 0xa03   :  { %v1670_v11 = vmul.f32 -1.442695, %v1166_v19  ;;  %v1671_v47 = vmul.f32 -1.442695, %v1179_v14 }
 0xa05   :  { %1831 = vpow2.f32 %v1670_v11 }
 0xa08   :  { %v1167_v58 = vpop.f32.mrf.mxu2  ;;  %v1180_v1 = vpop.f32.mrf.mxu3 }
 0xa0b   :  { %v1832_v34 = vpop.eup %1831 }
 0xa0c   :  { %v1185_v28 = vadd.f32 1.0, %v1832_v34 }
 0xa0e   :  { %1833 = vrcp.f32 %v1185_v28  ;;  %v1197_v18 = vand.u32 2147483648, %v1185_v28  ;;  %v1195_v63 = vand.u32 2147483647, %v1185_v28  ;;  %vm1191_vm7 = vweird.f32 %v1185_v28 }
 0xa0f   :  { %1835 = vtanh.f32 %v1179_v14 }
 0xa10   :  { %v1198_v40 = vor.u32 1.1754944e-38, %v1197_v18  ;;  %vm1196_vm9 = vcmp.eq.f32.partialorder %v1195_v63, 8.507059e+37  ;;  %1837 = vpow2.f32 %v1675_v8 }
 0xa14   :  { %v1834_v13 = vpop.eup %1833 }
 0xa15   :  { %v1187_v5 = vmul.f32 %v1834_v13, %v1185_v28  ;;  %vm1192_vm6 = vweird.f32 %v1834_v13  ;;  %v1836_v56 = vpop.eup %1835 }
 0xa16   :  { %vm1193_vm8 = vmor %vm1191_vm7, %vm1192_vm6  ;;  %v1838_v12 = vpop.eup %1837 }
 0xa17   :  { %v1188_v23 = vsub.f32 1.0, %v1187_v5  ;;  %v1288_v22 = vadd.f32 1.0, %v1838_v12 }
 0xa19   :  { %v1189_v32 = vmul.f32 %v1834_v13, %v1188_v23  ;;  %1839 = vrcp.f32 %v1288_v22  ;;  %v1300_v52 = vand.u32 2147483648, %v1288_v22  ;;  %vm1294_vm11 = vweird.f32 %v1288_v22 }
 0xa1a   :  { %v1298_v21 = vand.u32 2147483647, %v1288_v22 }
 0xa1b   :  { %v1190_v20 = vadd.f32 %v1834_v13, %v1189_v32  ;;  %v1301_v30 = vor.u32 1.1754944e-38, %v1300_v52 }
 0xa1c   :  { %vm1299_vm13 = vcmp.eq.f32.partialorder %v1298_v21, 8.507059e+37 }
 0xa1d   :  { %v1194_v54 = vsel %vm1193_vm8, %v1834_v13, %v1190_v20 }
 0xa1e   :  { %v1199_v0 = vsel %vm1196_vm9, %v1198_v40, %v1194_v54 }
 0xa1f   :  { %v1222_v42 = vmul.f32 %v1836_v56, %v1199_v0  ;;  %v1840_v3 = vpop.eup %1839  ;;  %v1221_v17 = vmul.f32 %v1199_v0, %v2519_v9 }
 0xa20   :  { %v1290_v10 = vmul.f32 %v1840_v3, %v1288_v22  ;;  %vm1295_vm1 = vweird.f32 %v1840_v3 }
 0xa21   :  { %1224 = vrot.lane.b32.xlu1 %v1222_v42, %s1972_s3  ;;  %vm1296_vm12 = vmor %vm1294_vm11, %vm1295_vm1  ;;  %v218_v42 = vadd.f32 %v2351_v51, %v2110_v49  ;;  %v247_v51 = vadd.f32 %v2349_v48, %v2113_v60 }
 0xa22   :  { %v1291_v16 = vsub.f32 1.0, %v1290_v10 }
 0xa24   :  { %v1292_v24 = vmul.f32 %v1840_v3, %v1291_v16 }
 0xa26   :  { %v1293_v36 = vadd.f32 %v1840_v3, %v1292_v24 }
 0xa28   :  { %v1297_v27 = vsel %vm1296_vm12, %v1840_v3, %v1293_v36 }
 0xa29   :  { %v1302_v39 = vsel %vm1299_vm13, %v1301_v30, %v1297_v27 }
 0xa5c   :  { %v1308_v37 = vpop.permute.xlu2 %1307 }
 0xa5d   :  { %v2548_v38 = vadd.f32 %v1308_v37, %v1304_v25 }
 0xa5f   :  { %1841 = vtanh.f32 %v2548_v38 }
 0xa60   :  { %1843 = vpow2.f32 %v1671_v47 }
 0xa65   :  { %v1842_v31 = vpop.eup %1841 }
 0xa66   :  { %v1312_v41 = vmul.f32 %v1842_v31, %v1302_v39  ;;  %v1844_v50 = vpop.eup %1843 }
 0xa67   :  { %v1205_v55 = vadd.f32 1.0, %v1844_v50 }
 0xa68   :  { %1314 = vrot.lane.b32.xlu2 %v1312_v41, %s1972_s3  ;;  %v1393_v53 = vpack.c.bf16 %v1312_v41, %v1312_v41 }
 0xa69   :  { %1845 = vrcp.f32 %v1205_v55  ;;  %v1217_v45 = vand.u32 2147483648, %v1205_v55  ;;  %vm1211_vm15 = vweird.f32 %v1205_v55  ;;  %v1215_v59 = vand.u32 2147483647, %v1205_v55 }
 0xa6a   :  { %1395 = vrot.lane.b32.xlu0 %v1393_v53, %s1972_s3 }
 0xa6b   :  { %v1218_v35 = vor.u32 1.1754944e-38, %v1217_v45  ;;  %vm1216_vm2 = vcmp.eq.f32.partialorder %v1215_v59, 8.507059e+37 }
 0xa6f   :  { %v1846_v57 = vpop.eup %1845 }
 0xa70   :  { %v1207_v4 = vmul.f32 %v1846_v57, %v1205_v55  ;;  %vm1212_vm14 = vweird.f32 %v1846_v57 }
 0xa71   :  { %vm1213_vm0 = vmor %vm1211_vm15, %vm1212_vm14 }
 0xa72   :  { %v1208_v7 = vsub.f32 1.0, %v1207_v4 }
 0xa74   :  { %v1209_v33 = vmul.f32 %v1846_v57, %v1208_v7 }
 0xa76   :  { %v1210_v46 = vadd.f32 %v1846_v57, %v1209_v33 }
 0xa78   :  { %v1214_v6 = vsel %vm1213_vm0, %v1846_v57, %v1210_v46 }
 0xa79   :  { %v1219_v2 = vsel %vm1216_vm2, %v1218_v35, %v1214_v6 }
 0xa93   :  { %v1225_v15 = vpop.permute.xlu1 %1224 }
 0xa94   :  { %v2554_v29 = vadd.f32 %v1225_v15, %v1221_v17 }
 0xa96   :  { %1847 = vtanh.f32 %v2554_v29 }
 0xa9c   :  { %v1848_v26 = vpop.eup %1847 }
 0xa9d   :  { %v1229_v62 = vmul.f32 %v1848_v26, %v1219_v2 }
 0xac2   :  { %v1315_v44 = vpop.permute.xlu2 %1314 }
 0xac3   :  { %v1317_v9 = vsel %vm255_vm10, %v1315_v44, %v1229_v62 }
 0xac4   :  { %v1318_v19 = vpack.c.bf16 %v1317_v9, %v1317_v9 }
 0xac6   :  { %1327 = vmatmul.bf16.vlgmr.msra.gmra.mxu0 %v1318_v19  ;;  %1340 = vmatmul.bf16.vlgmr.msrb.gmra.mxu1 %v1318_v19 }
 0xadc   :  { %v1396_v11 = vpop.permute.xlu0 %1395 }
 0xadd   :  { %1678 = vmatmul.msk.bf16.vlgmr.msrb.gmra.mxu2 %vm255_vm10, %v1396_v11  ;;  %1679 = vmatmul.msk.bf16.vlgmr.msra.gmra.mxu3 %vm255_vm10, %v1396_v11 }
 0xb43   :  { %v1328_v58 = vpop.f32.mrf.mxu0  ;;  %v1341_v1 = vpop.f32.mrf.mxu1 }
 0xb44   :  { %v1329_v34 = vadd.f32 %v1328_v58, %v2255_v43  ;;  %v2562_v32 = vadd.f32 %v1341_v1, %v2259_v61 }
 0xb46   :  { %v1676_v28 = vmul.f32 -1.442695, %v1329_v34  ;;  %v1677_v34 = vmul.f32 -1.442695, %v2562_v32 }
 0xb48   :  { %1849 = vpow2.f32 %v1676_v28 }
 0xb4b   :  { %v1330_v13 = vpop.f32.mrf.mxu0  ;;  %v1343_v14 = vpop.f32.mrf.mxu1 }
 0xb4e   :  { %v1850_v5 = vpop.eup %1849 }
 0xb4f   :  { %v1348_v23 = vadd.f32 1.0, %v1850_v5 }
 0xb51   :  { %1851 = vrcp.f32 %v1348_v23  ;;  %v1360_v40 = vand.u32 2147483648, %v1348_v23  ;;  %v1358_v56 = vand.u32 2147483647, %v1348_v23  ;;  %vm1354_vm4 = vweird.f32 %v1348_v23 }
 0xb52   :  { %1853 = vtanh.f32 %v2562_v32 }
 0xb53   :  { %v1361_v8 = vor.u32 1.1754944e-38, %v1360_v40  ;;  %vm1359_vm6 = vcmp.eq.f32.partialorder %v1358_v56, 8.507059e+37 }
 0xb57   :  { %v1852_v18 = vpop.eup %1851 }
 0xb58   :  { %v1350_v63 = vmul.f32 %v1852_v18, %v1348_v23  ;;  %vm1355_vm3 = vweird.f32 %v1852_v18  ;;  %v1854_v10 = vpop.eup %1853 }
 0xb59   :  { %vm1356_vm5 = vmor %vm1354_vm4, %vm1355_vm3 }
 0xb5a   :  { %v1351_v20 = vsub.f32 1.0, %v1350_v63 }
 0xb5c   :  { %v1352_v54 = vmul.f32 %v1852_v18, %v1351_v20 }
 0xb5e   :  { %v1353_v0 = vadd.f32 %v1852_v18, %v1352_v54 }
 0xb60   :  { %v1409_v12 = vpop.f32.mrf.mxu2  ;;  %v1422_v22 = vpop.f32.mrf.mxu3  ;;  %v1357_v3 = vsel %vm1356_vm5, %v1852_v18, %v1353_v0 }
 0xb61   :  { %v1426_v16 = vadd.f32 %v1409_v12, %v218_v42  ;;  %v2567_v24 = vsel %vm1359_vm6, %v1361_v8, %v1357_v3  ;;  %v1427_v30 = vadd.f32 %v1422_v22, %v247_v51 }
 0xb62   :  { %v1385_v25 = vmul.f32 %v1854_v10, %v2567_v24  ;;  %v1384_v18 = vmul.f32 %v2567_v24, %v2554_v29 }
 0xb63   :  { %v1680_v37 = vmul.f32 -1.442695, %v1426_v16  ;;  %v1681_v60 = vmul.f32 -1.442695, %v1427_v30 }
 0xb64   :  { %1387 = vrot.lane.b32.xlu1 %v1385_v25, %s1972_s3 }
 0xb65   :  { %1855 = vpow2.f32 %v1680_v37 }
 0xb68   :  { %v1411_v36 = vpop.f32.mrf.mxu2  ;;  %v1424_v52 = vpop.f32.mrf.mxu3 }
 0xb6b   :  { %v1856_v21 = vpop.eup %1855 }
 0xb6c   :  { %v1431_v49 = vadd.f32 1.0, %v1856_v21 }
 0xb6e   :  { %1857 = vrcp.f32 %v1431_v49  ;;  %v1443_v41 = vand.u32 2147483648, %v1431_v49  ;;  %v1441_v47 = vand.u32 2147483647, %v1431_v49  ;;  %vm1437_vm8 = vweird.f32 %v1431_v49 }
 0xb6f   :  { %1859 = vtanh.f32 %v1427_v30 }
 0xb70   :  { %v1444_v55 = vor.u32 1.1754944e-38, %v1443_v41  ;;  %vm1442_vm1 = vcmp.eq.f32.partialorder %v1441_v47, 8.507059e+37  ;;  %1861 = vpow2.f32 %v1681_v60  ;;  %v1562_v60 = vld [vmem:[%s2628_s6 + $0x30] sm:$0xff] }
 0xb74   :  { %v1858_v27 = vpop.eup %1857 }
 0xb75   :  { %v1433_v31 = vmul.f32 %v1858_v27, %v1431_v49  ;;  %vm1438_vm7 = vweird.f32 %v1858_v27  ;;  %v1860_v4 = vpop.eup %1859 }
 0xb76   :  { %vm1439_vm9 = vmor %vm1437_vm8, %vm1438_vm7  ;;  %v1862_v48 = vpop.eup %1861 }
 0xb77   :  { %v1434_v39 = vsub.f32 1.0, %v1433_v31  ;;  %v1451_v17 = vadd.f32 1.0, %v1862_v48  ;;  %v1561_v48 = vld [vmem:[%s2628_s6 + $0x28] sm:$0xff] }
 0xb79   :  { %v1435_v53 = vmul.f32 %v1858_v27, %v1434_v39  ;;  %1863 = vrcp.f32 %v1451_v17  ;;  %v1463_v62 = vand.u32 2147483648, %v1451_v17  ;;  %vm1457_vm12 = vweird.f32 %v1451_v17 }
 0xb7a   :  { %v1461_v44 = vand.u32 2147483647, %v1451_v17 }
 0xb7b   :  { %v1436_v50 = vadd.f32 %v1858_v27, %v1435_v53  ;;  %v1464_v19 = vor.u32 1.1754944e-38, %v1463_v62 }
 0xb7c   :  { %vm1462_vm14 = vcmp.eq.f32.partialorder %v1461_v44, 8.507059e+37 }
 0xb7d   :  { %v1440_v57 = vsel %vm1439_vm9, %v1858_v27, %v1436_v50 }
 0xb7e   :  { %v1445_v7 = vsel %vm1442_vm1, %v1444_v55, %v1440_v57 }
 0xb7f   :  { %v1468_v15 = vmul.f32 %v1860_v4, %v1445_v7  ;;  %v1864_v33 = vpop.eup %1863  ;;  %v1467_v6 = vmul.f32 %v1445_v7, %v2548_v38 }
 0xb80   :  { %v1453_v46 = vmul.f32 %v1864_v33, %v1451_v17  ;;  %vm1458_vm11 = vweird.f32 %v1864_v33  ;;  %v1560_v17 = vld [vmem:[%s2628_s6 + $0x20] sm:$0xff] }
 0xb81   :  { %1470 = vrot.lane.b32.xlu0 %v1468_v15, %s1972_s3  ;;  %vm1459_vm13 = vmor %vm1457_vm12, %vm1458_vm11  ;;  %v1563_v15 = vld [vmem:[%s2628_s6 + $0x38] sm:$0xff]  ;;  %vm1593_vm12 = vcmask 39936  }
 0xb82   :  { %v1454_v45 = vsub.f32 1.0, %v1453_v46  ;;  %1581 = vmatpush.msrb.mxu0 %v1563_v15 }
 0xb84   :  { %v1455_v59 = vmul.f32 %v1864_v33, %v1454_v45  ;;  %1582 = vmatpush.msrb.mxu0 %v1562_v60  ;;  %v1558_v45 = vld [vmem:[%s2628_s6 + $0x10] sm:$0xff] }
 0xb86   :  { %v1456_v2 = vadd.f32 %v1864_v33, %v1455_v59  ;;  %1583 = vmatpush.msrb.mxu0 %v1561_v48 }
 0xb88   :  { %v1460_v9 = vsel %vm1459_vm13, %v1864_v33, %v1456_v2  ;;  %v1559_v33 = vld [vmem:[%s2628_s6 + $0x18] sm:$0xff]  ;;  %1584 = vmatpush.msrb.mxu0 %v1560_v17 }
 0xb89   :  { %v1465_v58 = vsel %vm1462_vm14, %v1464_v19, %v1460_v9 }
 0xb8a   :  { %1585 = vmatpush.msrb.mxu0 %v1559_v33 }
 0xb8c   :  { %1586 = vmatpush.msrb.mxu0 %v1558_v45 }
 0xbd6   :  { %v1388_v23 = vpop.permute.xlu1 %1387 }
 0xbd7   :  { %v2579_v63 = vadd.f32 %v1388_v23, %v1384_v18 }
 0xbf3   :  { %v1471_v26 = vpop.permute.xlu0 %1470 }
 0xbf4   :  { %v1473_v35 = vadd.f32 %v1471_v26, %v1467_v6  ;;  %v1557_v6 = vld [vmem:[%s2628_s6 + $0x8] sm:$0xff]  ;;  %v1556_v26 = vld [vmem:[%s2628_s6] sm:$0xff] }
 0xbf5   :  { %1587 = vmatpush.msrb.mxu0 %v1557_v6 }
 0xbf6   :  { %1865 = vtanh.f32 %v1473_v35 }
 0xbf7   :  { %1867 = vpow2.f32 %v1677_v34  ;;  %1588 = vmatpush.msrb.mxu0 %v1556_v26 }
 0xbfc   :  { %v1866_v11 = vpop.eup %1865 }
 0xbfd   :  { %v1475_v1 = vmul.f32 %v1866_v11, %v1465_v58  ;;  %v1868_v38 = vpop.eup %1867 }
 0xbfe   :  { %v1368_v28 = vadd.f32 1.0, %v1868_v38 }
 0xbff   :  { %1477 = vrot.lane.b32.xlu2 %v1475_v1, %s1972_s3 }
 0xc00   :  { %1869 = vrcp.f32 %v1368_v28  ;;  %v1380_v54 = vand.u32 2147483648, %v1368_v28  ;;  %vm1374_vm0 = vweird.f32 %v1368_v28  ;;  %v1378_v32 = vand.u32 2147483647, %v1368_v28 }
 0xc01   :  { %1871 = vtanh.f32 %v2579_v63 }
 0xc02   :  { %v1381_v42 = vor.u32 1.1754944e-38, %v1380_v54  ;;  %vm1379_vm3 = vcmp.eq.f32.partialorder %v1378_v32, 8.507059e+37 }
 0xc06   :  { %v1870_v13 = vpop.eup %1869 }
 0xc07   :  { %v1370_v14 = vmul.f32 %v1870_v13, %v1368_v28  ;;  %vm1375_vm15 = vweird.f32 %v1870_v13  ;;  %v1872_v0 = vpop.eup %1871 }
 0xc08   :  { %vm1376_vm2 = vmor %vm1374_vm0, %vm1375_vm15 }
 0xc09   :  { %v1371_v5 = vsub.f32 1.0, %v1370_v14 }
 0xc0b   :  { %v1372_v20 = vmul.f32 %v1870_v13, %v1371_v5  ;;  %v1692_v5 = vld [vmem:[%s2629_s7] ss:$0 sm:$0xff] }
 0xc0d   :  { %v1373_v40 = vadd.f32 %v1870_v13, %v1372_v20 }
 0xc0f   :  { %v1377_v56 = vsel %vm1376_vm2, %v1870_v13, %v1373_v40 }
 0xc10   :  { %v1382_v8 = vsel %vm1379_vm3, %v1381_v42, %v1377_v56 }
 0xc11   :  { %v1392_v12 = vmul.f32 %v1872_v0, %v1382_v8 }
 0xc59   :  { %v1478_v22 = vpop.permute.xlu2 %1477 }
 0xc5a   :  { %v1480_v29 = vsel %vm255_vm10, %v1478_v22, %v1392_v12 }
 0xc5b   :  { %v1481_v3 = vpack.c.bf16 %v1480_v29, %v1480_v29 }
 0xc5d   :  { %1490 = vmatmul.bf16.vlgmr.msra.gmra.mxu2 %v1481_v3  ;;  %1503 = vmatmul.bf16.vlgmr.msrb.gmra.mxu3 %v1481_v3 }
 0xce0   :  { %v1491_v10 = vpop.f32.mrf.mxu2  ;;  %v1504_v16 = vpop.f32.mrf.mxu3 }
 0xce1   :  { %v1492_v24 = vadd.f32 %v1491_v10, %v2255_v43  ;;  %v1505_v51 = vadd.f32 %v1504_v16, %v2259_v61 }
 0xce3   :  { %v1682_v25 = vmul.f32 -1.442695, %v1492_v24  ;;  %v1683_v4 = vmul.f32 -1.442695, %v1505_v51 }
 0xce5   :  { %1873 = vpow2.f32 %v1682_v25 }
 0xce8   :  { %v1493_v37 = vpop.f32.mrf.mxu2  ;;  %v1506_v36 = vpop.f32.mrf.mxu3 }
 0xceb   :  { %v1874_v52 = vpop.eup %1873 }
 0xcec   :  { %v1511_v21 = vadd.f32 1.0, %v1874_v52 }
 0xcee   :  { %1875 = vrcp.f32 %v1511_v21  ;;  %v1523_v31 = vand.u32 2147483648, %v1511_v21  ;;  %v1521_v41 = vand.u32 2147483647, %v1511_v21  ;;  %vm1517_vm5 = vweird.f32 %v1511_v21 }
 0xcef   :  { %1877 = vtanh.f32 %v1505_v51 }
 0xcf0   :  { %v1524_v43 = vor.u32 1.1754944e-38, %v1523_v31  ;;  %vm1522_vm7 = vcmp.eq.f32.partialorder %v1521_v41, 8.507059e+37  ;;  %1879 = vpow2.f32 %v1683_v4 }
 0xcf4   :  { %v1876_v49 = vpop.eup %1875 }
 0xcf5   :  { %v1513_v27 = vmul.f32 %v1876_v49, %v1511_v21  ;;  %vm1518_vm4 = vweird.f32 %v1876_v49  ;;  %v1878_v50 = vpop.eup %1877 }
 0xcf6   :  { %vm1519_vm6 = vmor %vm1517_vm5, %vm1518_vm4  ;;  %v1880_v61 = vpop.eup %1879 }
 0xcf7   :  { %v1514_v30 = vsub.f32 1.0, %v1513_v27  ;;  %v1531_v7 = vadd.f32 1.0, %v1880_v61 }
 0xcf9   :  { %v1515_v39 = vmul.f32 %v1876_v49, %v1514_v30  ;;  %1881 = vrcp.f32 %v1531_v7  ;;  %v1543_v11 = vand.u32 2147483648, %v1531_v7  ;;  %vm1537_vm9 = vweird.f32 %v1531_v7 }
 0xcfa   :  { %v1541_v58 = vand.u32 2147483647, %v1531_v7 }
 0xcfb   :  { %v1516_v53 = vadd.f32 %v1876_v49, %v1515_v39  ;;  %v1544_v34 = vor.u32 1.1754944e-38, %v1543_v11 }
 0xcfc   :  { %vm1542_vm11 = vcmp.eq.f32.partialorder %v1541_v58, 8.507059e+37 }
 0xcfd   :  { %v1520_v47 = vsel %vm1519_vm6, %v1876_v49, %v1516_v53 }
 0xcfe   :  { %v1525_v55 = vsel %vm1522_vm7, %v1524_v43, %v1520_v47 }
 0xcff   :  { %v1548_v57 = vmul.f32 %v1878_v50, %v1525_v55  ;;  %v1882_v46 = vpop.eup %1881  ;;  %v1547_v62 = vmul.f32 %v1525_v55, %v2579_v63 }
 0xd00   :  { %v1533_v59 = vmul.f32 %v1882_v46, %v1531_v7  ;;  %vm1538_vm8 = vweird.f32 %v1882_v46 }
 0xd01   :  { %1550 = vrot.lane.b32.xlu0 %v1548_v57, %s1972_s3  ;;  %vm1539_vm1 = vmor %vm1537_vm9, %vm1538_vm8 }
 0xd02   :  { %v1534_v35 = vsub.f32 1.0, %v1533_v59 }
 0xd04   :  { %v1535_v2 = vmul.f32 %v1882_v46, %v1534_v35 }
 0xd06   :  { %v1536_v19 = vadd.f32 %v1882_v46, %v1535_v2 }
 0xd08   :  { %v1540_v1 = vsel %vm1539_vm1, %v1882_v46, %v1536_v19 }
 0xd09   :  { %v1545_v28 = vsel %vm1542_vm11, %v1544_v34, %v1540_v1 }
 0xd73   :  { %v1551_v44 = vpop.permute.xlu0 %1550 }
 0xd74   :  { %v1553_v9 = vadd.f32 %v1551_v44, %v1547_v62 }
 0xd76   :  { %1883 = vtanh.f32 %v1553_v9 }
 0xd7c   :  { %v1884_v38 = vpop.eup %1883 }
 0xd7d   :  { %v1555_v13 = vmul.f32 %v1884_v38, %v1545_v28 }
 0xd7f   :  { %1569 = vrot.lane.b32.xlu1 %v1555_v13, %s1972_s3  ;;  %s1973_s3 = smov [#allocation7]  }
 0xd80   :  { %s1611_s9 = sshll.u32 %s1973_s3, 4  ;;  %s1612_s9 = int_to_ptr.vmem [resolvable:$true] %s1611_s9 }
 0xdf1   :  { %v1570_v14 = vpop.permute.xlu1 %1569 }
 0xdf2   :  { %1684 = vmatmul.msk.f32.vlgmr.msrb.gmra.mxu0 %vm255_vm10, %v1570_v14 }
 0xe6f   :  { %v1590_v23 = vpop.f32.mrf.mxu0 }
 0xe70   :  { %v1591_v18 = vadd.f32 %v1692_v5, %v1590_v23 }
 0xe72   :  { %v1594_v63 = vsel %vm1593_vm12, %v1591_v18, -inf }
 0xe73   :  { %1595 = vmax.xlane.f32.xlu2 %v1594_v63 }
 0xee6   :  { %v1596_v20 = vpop.xlane.xlu2 %1595 }
 0xee7   :  { %v1597_v40 = vsub.f32 %v1591_v18, %v1596_v20 }
 0xee9   :  { %v1598_v54 = vmul.f32 1.442695, %v1597_v40 }
 0xeeb   :  { %1885 = vpow2.f32 %v1598_v54 }
 0xef1   :  { %v1886_v32 = vpop.eup %1885 }
 0xef2   :  { %v1600_v56 = vsel %vm1593_vm12, %v1886_v32, 0.0 }
 0xef3   :  { %1601 = vadd.xlane.f32.xlu0 %v1600_v56 }
 0xf66   :  { %v1602_v0 = vpop.xlane.xlu0 %1601 }
 0xf67   :  { %1887 = vrcp.f32 %v1602_v0 }
 0xf6d   :  { %v1888_v42 = vpop.eup %1887 }
 0xf6e   :  { %v1604_v8 = vmul.f32 %v1888_v42, %v1886_v32 }
 0xf70   :  { %1605 = vst.msk [vmem:[#allocation7] sm:$0xff] %vm1593_vm12, %v1604_v8 }
 0xf71   :  { %1616 = dma.vmem_to_hbm [thread:$0]  %s1612_s9, 128, %s1614_s11, [#allocation4]  }
 0xf72   :  { %1965 = dma.done.wait [#allocation4], 128  }
 0xf73   :  { %1966 = vsyncadd [#allocation4], 4294967168 }
 0xf74   :  { %1621 = vsyncpa [#allocation3], 1 }
 0xf75   :  { %1622 = vsyncpa [#allocation6], 1 }
 0xf76   :  { %1623 = vsyncpa [#allocation4], 1 }

</bundles_post_ra>
